<compile_context>
chip_gen: v7x
topology: tpu7x:2x2x1
jax: 0.10.0
libtpu: 0.0.40
codegen_flags: <defaults>
</compile_context>

<pallas_src>
import math
import jax
import jax.numpy as jnp
from jax import lax
from jax.experimental import pallas as pl
from jax.experimental.pallas import tpu as pltpu

# ----------------------------- problem sizes --------------------------------
B, C, H, W, T = 2, 8, 16, 16, 32          # Bottleneck(channels=8, time_emb_dim=32)
G = min(8, C) if C >= 8 else C            # GroupNorm groups (module rule)
CS = C // G                               # channels per group
WC = W * C                                # lane-dense width (= 128)
BH = B * H                                # batch folded into the row (M) dim
EPS = 1e-5


# ------------------------------ fused kernel --------------------------------
def bottleneck_kernel(x_ref, p_ref, w1_ref, b1_ref, s1_ref, t1_ref,
                      w2_ref, b2_ref, s2_ref, t2_ref, o_ref):
    # Row masks: zero out rows whose y+-1 neighbor crosses an image (batch)
    # boundary after the roll. Built from a cheap 2-D iota (VPU only).
    row = lax.broadcasted_iota(jnp.int32, (BH, WC), 0) % H
    keep_up = row != 0                       # row y-1 exists within the image
    keep_dn = row != H - 1                   # row y+1 exists within the image
    zero = jnp.zeros((BH, WC), jnp.float32)

    P = p_ref[...]                           # (WC, WC) group-broadcast matrix
    inv_cnt = 1.0 / float(H * W * CS)

    def conv_gn_film_silu(a, w_ref, bias, scale, shift):
        # ---- 3x3 SAME conv as one lane-dense matmul -------------------------
        # roll(+1): new[y] = a[y-1]; roll(BH-1) == roll(-1): new[y] = a[y+1].
        up = jnp.where(keep_up, pltpu.roll(a, shift=1, axis=0), zero)
        dn = jnp.where(keep_dn, pltpu.roll(a, shift=BH - 1, axis=0), zero)
        patches = jnp.concatenate([up, a, dn], axis=1)          # (BH, 3*WC)
        h = jnp.dot(patches, w_ref[...],
                    preferred_element_type=jnp.float32) + bias  # (BH, WC)

        # ---- GroupNorm (two-pass, centered variance), per batch -------------
        # Static slices at multiples of H (H % 8 == 0 -> sublane-aligned).
        parts = []
        for b in range(B):
            hb = h[b * H:(b + 1) * H]                           # (H, WC)
            rowsum = jnp.sum(hb, axis=0, keepdims=True)         # (1, WC)
            mean = jnp.dot(rowsum, P,
                           preferred_element_type=jnp.float32) * inv_cnt
            hc = hb - mean
            sqsum = jnp.sum(hc * hc, axis=0, keepdims=True)
            var = jnp.dot(sqsum, P,
                          preferred_element_type=jnp.float32) * inv_cnt
            parts.append(hc * lax.rsqrt(var + EPS))
        hn = jnp.concatenate(parts, axis=0)                     # (BH, WC)

        # ---- fused GroupNorm affine + FiLM, then SiLU ------------------------
        hn = hn * scale + shift
        return hn * jax.nn.sigmoid(hn)

    a = x_ref[...]                                              # (BH, WC)
    h = conv_gn_film_silu(a, w1_ref, b1_ref[...], s1_ref[...], t1_ref[...])
    h = conv_gn_film_silu(h, w2_ref, b2_ref[...], s2_ref[...], t2_ref[...])
    o_ref[...] = h


# ------------------------- wrapper-side preprocessing ------------------------
def _conv_weight_slab(k_hwio):
    """(3,3,Cin,Cout) HWIO kernel -> (3*W*Cin, W*Cout) lane-dense weight slab.

    Row (dy-block, w_in, ci) -> column (w_out, co) holds k[dy, w_in-w_out+1, ci, co]
    when |w_in - w_out| <= 1 and 0 otherwise, i.e. the W-direction shift and
    zero-padding of a SAME conv are folded directly into the weight.
    """
    w_in = jnp.arange(W)[None, :, None]
    w_out = jnp.arange(W)[None, None, :]
    dx = jnp.arange(3)[:, None, None] - 1
    m = (w_in == w_out + dx).astype(jnp.float32)                # (3, W, W)
    slab = jnp.einsum("xab,yxio->yaibo", m, k_hwio,
                      precision=lax.Precision.HIGHEST)          # (3, W, C, W, C)
    return slab.reshape(3 * WC, WC)


def _group_broadcast_matrix():
    """(WC, WC) matrix: P[i, j] = 1 iff lanes i, j belong to the same group."""
    grp = (jnp.arange(WC) % C) // CS
    return (grp[:, None] == grp[None, :]).astype(jnp.float32)


def _lane_map_const(v_c):                                       # (C,) -> (1, WC)
    return jnp.tile(v_c, (W,))[None, :]


def _lane_map_batch(v_bc):                                      # (B, C) -> (BH, WC)
    v = jnp.tile(v_bc, (1, W))                                  # (B, WC)
    return jnp.broadcast_to(v[:, None, :], (B, H, WC)).reshape(BH, WC)


def bottleneck_pallas(x_nchw, time_emb, params):
    """Matches Bottleneck.forward(x, time_emb); returns (B, C, H, W)."""
    # Static layout assumptions of this kernel — fail loudly on reuse.
    assert WC == 128, "lane-dense layout requires W*C == 128"
    assert H % 8 == 0, "H must be sublane-aligned (multiple of 8)"
    assert C % G == 0, "channels must divide evenly into GroupNorm groups"

    x_ld = jnp.transpose(x_nchw, (0, 2, 3, 1)).astype(jnp.float32).reshape(BH, WC)

    # FiLM MLP (SiLU -> Linear) in plain jnp: tiny, fused by XLA, no extra launch.
    t = time_emb.astype(jnp.float32)
    t = t * jax.nn.sigmoid(t)
    film = t @ params["film_w"] + params["film_b"]              # (B, 4*C)
    g1, be1, g2, be2 = jnp.split(film, 4, axis=1)               # each (B, C)

    # Fold GroupNorm affine into FiLM:  gamma*(xhat*w + b) + beta
    #                                 = xhat*(w*gamma) + (b*gamma + beta)
    scale1 = _lane_map_batch(params["gn1_w"][None, :] * g1)
    shift1 = _lane_map_batch(params["gn1_b"][None, :] * g1 + be1)
    scale2 = _lane_map_batch(params["gn2_w"][None, :] * g2)
    shift2 = _lane_map_batch(params["gn2_b"][None, :] * g2 + be2)

    b1_map = _lane_map_const(params["b1"])
    b2_map = _lane_map_const(params["b2"])
    w1_slab = _conv_weight_slab(params["w1"])
    w2_slab = _conv_weight_slab(params["w2"])
    p_mat = _group_broadcast_matrix()

    # Single grid-less call: full arrays land in VMEM once (~0.6 MiB total).
    # On v7x one could alternatively split the two batches across the two
    # TensorCores with grid=(B,) + dimension_semantics=("parallel",); at ~3
    # MFLOPs/batch the fused single-step variant is expected to win.
    out_ld = pl.pallas_call(
        bottleneck_kernel,
        out_shape=jax.ShapeDtypeStruct((BH, WC), jnp.float32),
    )(x_ld, p_mat, w1_slab, b1_map, scale1, shift1,
      w2_slab, b2_map, scale2, shift2)

    return jnp.transpose(out_ld.reshape(B, H, W, C), (0, 3, 1, 2))


# --------------------------- pure-JAX reference ------------------------------
def _ref_groupnorm(x, groups, w, b):
    bb, hh, ww, cc = x.shape
    xr = x.reshape(bb, hh, ww, groups, cc // groups)
    mean = jnp.mean(xr, axis=(1, 2, 4), keepdims=True)
    var = jnp.mean((xr - mean) ** 2, axis=(1, 2, 4), keepdims=True)
    xn = (xr - mean) * lax.rsqrt(var + EPS)
    return xn.reshape(bb, hh, ww, cc) * w.reshape(1, 1, 1, cc) + b.reshape(1, 1, 1, cc)


def bottleneck_ref(x_nchw, time_emb, params):
    x = jnp.transpose(x_nchw, (0, 2, 3, 1)).astype(jnp.float32)
    t = time_emb.astype(jnp.float32)
    t = t * jax.nn.sigmoid(t)
    film = t @ params["film_w"] + params["film_b"]
    g1, be1, g2, be2 = jnp.split(film, 4, axis=1)

    def conv(h, w, b):
        y = lax.conv_general_dilated(h, w, (1, 1), "SAME",
                                     dimension_numbers=("NHWC", "HWIO", "NHWC"),
                                     precision=lax.Precision.HIGHEST)
        return y + b.reshape(1, 1, 1, -1)

    h = conv(x, params["w1"], params["b1"])
    h = _ref_groupnorm(h, G, params["gn1_w"], params["gn1_b"])
    h = g1[:, None, None, :] * h + be1[:, None, None, :]
    h = h * jax.nn.sigmoid(h)
    h = conv(h, params["w2"], params["b2"])
    h = _ref_groupnorm(h, G, params["gn2_w"], params["gn2_b"])
    h = g2[:, None, None, :] * h + be2[:, None, None, :]
    h = h * jax.nn.sigmoid(h)
    return jnp.transpose(h, (0, 3, 1, 2))


# ----------------------------------- main ------------------------------------
if __name__ == "__main__":
    key = jax.random.PRNGKey(0)
    ks = jax.random.split(key, 12)

    params = {
        "w1": jax.random.normal(ks[0], (3, 3, C, C), jnp.float32) / math.sqrt(9 * C),
        "b1": 0.05 * jax.random.normal(ks[1], (C,), jnp.float32),
        "gn1_w": 1.0 + 0.1 * jax.random.normal(ks[2], (C,), jnp.float32),
        "gn1_b": 0.1 * jax.random.normal(ks[3], (C,), jnp.float32),
        "w2": jax.random.normal(ks[4], (3, 3, C, C), jnp.float32) / math.sqrt(9 * C),
        "b2": 0.05 * jax.random.normal(ks[5], (C,), jnp.float32),
        "gn2_w": 1.0 + 0.1 * jax.random.normal(ks[6], (C,), jnp.float32),
        "gn2_b": 0.1 * jax.random.normal(ks[7], (C,), jnp.float32),
        "film_w": jax.random.normal(ks[8], (T, 4 * C), jnp.float32) / math.sqrt(T),
        "film_b": 0.05 * jax.random.normal(ks[9], (4 * C,), jnp.float32),
    }

    x = jax.random.normal(ks[10], (B, C, H, W), jnp.float32)      # NCHW like PyTorch
    time_emb = jax.random.normal(ks[11], (B, T), jnp.float32)

    fwd = jax.jit(lambda xx, tt: bottleneck_pallas(xx, tt, params))
    out = jax.block_until_ready(fwd(x, time_emb))

    ref = bottleneck_ref(x, time_emb, params)
    assert out.shape == (B, C, H, W)
    assert jnp.allclose(out, ref, atol=1e-3, rtol=1e-3)

    print("KERNEL_OK")
</pallas_src>

<mosaic_0001>
module attributes {stable_mosaic.version = 11 : i64} {
  func.func @bottleneck_kernel(%arg0: memref<32x128xf32, #tpu.memory_space<vmem>>, %arg1: memref<128x128xf32, #tpu.memory_space<vmem>>, %arg2: memref<384x128xf32, #tpu.memory_space<vmem>>, %arg3: memref<1x128xf32, #tpu.memory_space<vmem>>, %arg4: memref<32x128xf32, #tpu.memory_space<vmem>>, %arg5: memref<32x128xf32, #tpu.memory_space<vmem>>, %arg6: memref<384x128xf32, #tpu.memory_space<vmem>>, %arg7: memref<1x128xf32, #tpu.memory_space<vmem>>, %arg8: memref<32x128xf32, #tpu.memory_space<vmem>>, %arg9: memref<32x128xf32, #tpu.memory_space<vmem>>, %arg10: memref<32x128xf32, #tpu.memory_space<vmem>>) attributes {dimension_semantics = [], scalar_prefetch = 0 : i64, scratch_operands = 0 : i64, tpu.core_type = #tpu.core_type<tc>} {
    %0 = tpu.iota {dimensions = array<i32: 0>} : vector<32x128xi32>
    %c16_i32 = arith.constant 16 : i32
    %c0_i32 = arith.constant 0 : i32
    %1 = arith.cmpi eq, %c16_i32, %c0_i32 : i32
    %c1_i32 = arith.constant 1 : i32
    %2 = arith.select %1, %c1_i32, %c16_i32 : i32
    %3 = vector.broadcast %2 : i32 to vector<32x128xi32>
    %4 = arith.remsi %0, %3 : vector<32x128xi32>
    %c0_i32_0 = arith.constant 0 : i32
    %5 = vector.broadcast %c0_i32_0 : i32 to vector<32x128xi32>
    %6 = arith.cmpi ne, %4, %5 : vector<32x128xi32>
    %c0_i32_1 = arith.constant 0 : i32
    %7 = vector.broadcast %c0_i32_1 : i32 to vector<32x128xi32>
    %8 = arith.cmpi slt, %4, %7 : vector<32x128xi32>
    %c0_i32_2 = arith.constant 0 : i32
    %9 = arith.cmpi slt, %2, %c0_i32_2 : i32
    %10 = vector.broadcast %9 : i1 to vector<32x128xi1>
    %11 = vector.broadcast %10 : vector<32x128xi1> to vector<32x128xi1>
    %12 = arith.xori %8, %11 : vector<32x128xi1>
    %13 = arith.andi %12, %6 : vector<32x128xi1>
    %14 = vector.broadcast %2 : i32 to vector<32x128xi32>
    %15 = arith.addi %4, %14 : vector<32x128xi32>
    %16 = arith.select %13, %15, %4 : vector<32x128xi1>, vector<32x128xi32>
    %c0_i32_3 = arith.constant 0 : i32
    %17 = vector.broadcast %c0_i32_3 : i32 to vector<32x128xi32>
    %18 = arith.cmpi ne, %16, %17 : vector<32x128xi32>
    %c15_i32 = arith.constant 15 : i32
    %19 = vector.broadcast %c15_i32 : i32 to vector<32x128xi32>
    %20 = arith.cmpi ne, %16, %19 : vector<32x128xi32>
    %cst = arith.constant 0.000000e+00 : f32
    %21 = vector.broadcast %cst : f32 to vector<32x128xf32>
    %c0 = arith.constant 0 : index
    %c0_4 = arith.constant 0 : index
    %22 = vector.load %arg1[%c0, %c0_4] : memref<128x128xf32, #tpu.memory_space<vmem>>, vector<128x128xf32>
    %c0_5 = arith.constant 0 : index
    %c0_6 = arith.constant 0 : index
    %23 = vector.load %arg0[%c0_5, %c0_6] : memref<32x128xf32, #tpu.memory_space<vmem>>, vector<32x128xf32>
    %c0_7 = arith.constant 0 : index
    %c0_8 = arith.constant 0 : index
    %24 = vector.load %arg3[%c0_7, %c0_8] : memref<1x128xf32, #tpu.memory_space<vmem>>, vector<1x128xf32>
    %c0_9 = arith.constant 0 : index
    %c0_10 = arith.constant 0 : index
    %25 = vector.load %arg4[%c0_9, %c0_10] : memref<32x128xf32, #tpu.memory_space<vmem>>, vector<32x128xf32>
    %c0_11 = arith.constant 0 : index
    %c0_12 = arith.constant 0 : index
    %26 = vector.load %arg5[%c0_11, %c0_12] : memref<32x128xf32, #tpu.memory_space<vmem>>, vector<32x128xf32>
    %c1_i32_13 = arith.constant 1 : i32
    %27 = tpu.dynamic_rotate %23 by %c1_i32_13 dim 0 : vector<32x128xf32>, i32 -> vector<32x128xf32>
    %28 = arith.select %18, %27, %21 : vector<32x128xi1>, vector<32x128xf32>
    %c31_i32 = arith.constant 31 : i32
    %29 = tpu.dynamic_rotate %23 by %c31_i32 dim 0 : vector<32x128xf32>, i32 -> vector<32x128xf32>
    %30 = arith.select %20, %29, %21 : vector<32x128xi1>, vector<32x128xf32>
    %31 = tpu.concatenate %28, %23, %30 in 1 : vector<32x128xf32>, vector<32x128xf32>, vector<32x128xf32> -> vector<32x384xf32>
    %c0_14 = arith.constant 0 : index
    %c0_15 = arith.constant 0 : index
    %32 = vector.load %arg2[%c0_14, %c0_15] : memref<384x128xf32, #tpu.memory_space<vmem>>, vector<384x128xf32>
    %cst_16 = arith.constant dense<0.000000e+00> : vector<32x128xf32>
    %33 = tpu.matmul %31, %32, %cst_16 {dimension_numbers = #tpu.dot_dimension_numbers<[1], [0], [0], [1], [0, 0, 1, 1], [], []>} : vector<32x384xf32>, vector<384x128xf32>, vector<32x128xf32> -> vector<32x128xf32>
    %34 = vector.broadcast %24 : vector<1x128xf32> to vector<32x128xf32>
    %35 = arith.addf %33, %34 : vector<32x128xf32>
    %36 = vector.extract_strided_slice %35 {offsets = [0, 0], sizes = [16, 128], strides = [1, 1]} : vector<32x128xf32> to vector<16x128xf32>
    %cst_17 = arith.constant dense<0.000000e+00> : vector<128xf32>
    %37 = vector.multi_reduction <add>, %36, %cst_17 [0] : vector<16x128xf32> to vector<128xf32>
    %38 = vector.shape_cast %37 : vector<128xf32> to vector<1x128xf32>
    %cst_18 = arith.constant dense<0.000000e+00> : vector<1x128xf32>
    %39 = tpu.matmul %38, %22, %cst_18 {dimension_numbers = #tpu.dot_dimension_numbers<[1], [0], [0], [1], [0, 0, 1, 1], [], []>} : vector<1x128xf32>, vector<128x128xf32>, vector<1x128xf32> -> vector<1x128xf32>
    %cst_19 = arith.constant 3.906250e-03 : f32
    %40 = vector.broadcast %cst_19 : f32 to vector<1x128xf32>
    %41 = arith.mulf %39, %40 : vector<1x128xf32>
    %42 = vector.broadcast %41 : vector<1x128xf32> to vector<16x128xf32>
    %43 = arith.subf %36, %42 : vector<16x128xf32>
    %44 = arith.mulf %43, %43 : vector<16x128xf32>
    %cst_20 = arith.constant dense<0.000000e+00> : vector<128xf32>
    %45 = vector.multi_reduction <add>, %44, %cst_20 [0] : vector<16x128xf32> to vector<128xf32>
    %46 = vector.shape_cast %45 : vector<128xf32> to vector<1x128xf32>
    %cst_21 = arith.constant dense<0.000000e+00> : vector<1x128xf32>
    %47 = tpu.matmul %46, %22, %cst_21 {dimension_numbers = #tpu.dot_dimension_numbers<[1], [0], [0], [1], [0, 0, 1, 1], [], []>} : vector<1x128xf32>, vector<128x128xf32>, vector<1x128xf32> -> vector<1x128xf32>
    %cst_22 = arith.constant 3.906250e-03 : f32
    %48 = vector.broadcast %cst_22 : f32 to vector<1x128xf32>
    %49 = arith.mulf %47, %48 : vector<1x128xf32>
    %cst_23 = arith.constant 9.99999974E-6 : f32
    %50 = vector.broadcast %cst_23 : f32 to vector<1x128xf32>
    %51 = arith.addf %49, %50 : vector<1x128xf32>
    %52 = math.rsqrt %51 : vector<1x128xf32>
    %53 = vector.broadcast %52 : vector<1x128xf32> to vector<16x128xf32>
    %54 = arith.mulf %43, %53 : vector<16x128xf32>
    %55 = vector.extract_strided_slice %35 {offsets = [16, 0], sizes = [16, 128], strides = [1, 1]} : vector<32x128xf32> to vector<16x128xf32>
    %cst_24 = arith.constant dense<0.000000e+00> : vector<128xf32>
    %56 = vector.multi_reduction <add>, %55, %cst_24 [0] : vector<16x128xf32> to vector<128xf32>
    %57 = vector.shape_cast %56 : vector<128xf32> to vector<1x128xf32>
    %cst_25 = arith.constant dense<0.000000e+00> : vector<1x128xf32>
    %58 = tpu.matmul %57, %22, %cst_25 {dimension_numbers = #tpu.dot_dimension_numbers<[1], [0], [0], [1], [0, 0, 1, 1], [], []>} : vector<1x128xf32>, vector<128x128xf32>, vector<1x128xf32> -> vector<1x128xf32>
    %cst_26 = arith.constant 3.906250e-03 : f32
    %59 = vector.broadcast %cst_26 : f32 to vector<1x128xf32>
    %60 = arith.mulf %58, %59 : vector<1x128xf32>
    %61 = vector.broadcast %60 : vector<1x128xf32> to vector<16x128xf32>
    %62 = arith.subf %55, %61 : vector<16x128xf32>
    %63 = arith.mulf %62, %62 : vector<16x128xf32>
    %cst_27 = arith.constant dense<0.000000e+00> : vector<128xf32>
    %64 = vector.multi_reduction <add>, %63, %cst_27 [0] : vector<16x128xf32> to vector<128xf32>
    %65 = vector.shape_cast %64 : vector<128xf32> to vector<1x128xf32>
    %cst_28 = arith.constant dense<0.000000e+00> : vector<1x128xf32>
    %66 = tpu.matmul %65, %22, %cst_28 {dimension_numbers = #tpu.dot_dimension_numbers<[1], [0], [0], [1], [0, 0, 1, 1], [], []>} : vector<1x128xf32>, vector<128x128xf32>, vector<1x128xf32> -> vector<1x128xf32>
    %cst_29 = arith.constant 3.906250e-03 : f32
    %67 = vector.broadcast %cst_29 : f32 to vector<1x128xf32>
    %68 = arith.mulf %66, %67 : vector<1x128xf32>
    %cst_30 = arith.constant 9.99999974E-6 : f32
    %69 = vector.broadcast %cst_30 : f32 to vector<1x128xf32>
    %70 = arith.addf %68, %69 : vector<1x128xf32>
    %71 = math.rsqrt %70 : vector<1x128xf32>
    %72 = vector.broadcast %71 : vector<1x128xf32> to vector<16x128xf32>
    %73 = arith.mulf %62, %72 : vector<16x128xf32>
    %74 = tpu.concatenate %54, %73 in 0 : vector<16x128xf32>, vector<16x128xf32> -> vector<32x128xf32>
    %75 = arith.mulf %74, %25 : vector<32x128xf32>
    %76 = arith.addf %75, %26 : vector<32x128xf32>
    %77 = arith.negf %76 : vector<32x128xf32>
    %78 = math.exp %77 : vector<32x128xf32>
    %cst_31 = arith.constant 1.000000e+00 : f32
    %79 = vector.broadcast %cst_31 : f32 to vector<32x128xf32>
    %80 = arith.addf %79, %78 : vector<32x128xf32>
    %81 = arith.divf %79, %80 : vector<32x128xf32>
    %82 = arith.mulf %76, %81 : vector<32x128xf32>
    %c0_32 = arith.constant 0 : index
    %c0_33 = arith.constant 0 : index
    %83 = vector.load %arg7[%c0_32, %c0_33] : memref<1x128xf32, #tpu.memory_space<vmem>>, vector<1x128xf32>
    %c0_34 = arith.constant 0 : index
    %c0_35 = arith.constant 0 : index
    %84 = vector.load %arg8[%c0_34, %c0_35] : memref<32x128xf32, #tpu.memory_space<vmem>>, vector<32x128xf32>
    %c0_36 = arith.constant 0 : index
    %c0_37 = arith.constant 0 : index
    %85 = vector.load %arg9[%c0_36, %c0_37] : memref<32x128xf32, #tpu.memory_space<vmem>>, vector<32x128xf32>
    %c1_i32_38 = arith.constant 1 : i32
    %86 = tpu.dynamic_rotate %82 by %c1_i32_38 dim 0 : vector<32x128xf32>, i32 -> vector<32x128xf32>
    %87 = arith.select %18, %86, %21 : vector<32x128xi1>, vector<32x128xf32>
    %c31_i32_39 = arith.constant 31 : i32
    %88 = tpu.dynamic_rotate %82 by %c31_i32_39 dim 0 : vector<32x128xf32>, i32 -> vector<32x128xf32>
    %89 = arith.select %20, %88, %21 : vector<32x128xi1>, vector<32x128xf32>
    %90 = tpu.concatenate %87, %82, %89 in 1 : vector<32x128xf32>, vector<32x128xf32>, vector<32x128xf32> -> vector<32x384xf32>
    %c0_40 = arith.constant 0 : index
    %c0_41 = arith.constant 0 : index
    %91 = vector.load %arg6[%c0_40, %c0_41] : memref<384x128xf32, #tpu.memory_space<vmem>>, vector<384x128xf32>
    %cst_42 = arith.constant dense<0.000000e+00> : vector<32x128xf32>
    %92 = tpu.matmul %90, %91, %cst_42 {dimension_numbers = #tpu.dot_dimension_numbers<[1], [0], [0], [1], [0, 0, 1, 1], [], []>} : vector<32x384xf32>, vector<384x128xf32>, vector<32x128xf32> -> vector<32x128xf32>
    %93 = vector.broadcast %83 : vector<1x128xf32> to vector<32x128xf32>
    %94 = arith.addf %92, %93 : vector<32x128xf32>
    %95 = vector.extract_strided_slice %94 {offsets = [0, 0], sizes = [16, 128], strides = [1, 1]} : vector<32x128xf32> to vector<16x128xf32>
    %cst_43 = arith.constant dense<0.000000e+00> : vector<128xf32>
    %96 = vector.multi_reduction <add>, %95, %cst_43 [0] : vector<16x128xf32> to vector<128xf32>
    %97 = vector.shape_cast %96 : vector<128xf32> to vector<1x128xf32>
    %cst_44 = arith.constant dense<0.000000e+00> : vector<1x128xf32>
    %98 = tpu.matmul %97, %22, %cst_44 {dimension_numbers = #tpu.dot_dimension_numbers<[1], [0], [0], [1], [0, 0, 1, 1], [], []>} : vector<1x128xf32>, vector<128x128xf32>, vector<1x128xf32> -> vector<1x128xf32>
    %cst_45 = arith.constant 3.906250e-03 : f32
    %99 = vector.broadcast %cst_45 : f32 to vector<1x128xf32>
    %100 = arith.mulf %98, %99 : vector<1x128xf32>
    %101 = vector.broadcast %100 : vector<1x128xf32> to vector<16x128xf32>
    %102 = arith.subf %95, %101 : vector<16x128xf32>
    %103 = arith.mulf %102, %102 : vector<16x128xf32>
    %cst_46 = arith.constant dense<0.000000e+00> : vector<128xf32>
    %104 = vector.multi_reduction <add>, %103, %cst_46 [0] : vector<16x128xf32> to vector<128xf32>
    %105 = vector.shape_cast %104 : vector<128xf32> to vector<1x128xf32>
    %cst_47 = arith.constant dense<0.000000e+00> : vector<1x128xf32>
    %106 = tpu.matmul %105, %22, %cst_47 {dimension_numbers = #tpu.dot_dimension_numbers<[1], [0], [0], [1], [0, 0, 1, 1], [], []>} : vector<1x128xf32>, vector<128x128xf32>, vector<1x128xf32> -> vector<1x128xf32>
    %cst_48 = arith.constant 3.906250e-03 : f32
    %107 = vector.broadcast %cst_48 : f32 to vector<1x128xf32>
    %108 = arith.mulf %106, %107 : vector<1x128xf32>
    %cst_49 = arith.constant 9.99999974E-6 : f32
    %109 = vector.broadcast %cst_49 : f32 to vector<1x128xf32>
    %110 = arith.addf %108, %109 : vector<1x128xf32>
    %111 = math.rsqrt %110 : vector<1x128xf32>
    %112 = vector.broadcast %111 : vector<1x128xf32> to vector<16x128xf32>
    %113 = arith.mulf %102, %112 : vector<16x128xf32>
    %114 = vector.extract_strided_slice %94 {offsets = [16, 0], sizes = [16, 128], strides = [1, 1]} : vector<32x128xf32> to vector<16x128xf32>
    %cst_50 = arith.constant dense<0.000000e+00> : vector<128xf32>
    %115 = vector.multi_reduction <add>, %114, %cst_50 [0] : vector<16x128xf32> to vector<128xf32>
    %116 = vector.shape_cast %115 : vector<128xf32> to vector<1x128xf32>
    %cst_51 = arith.constant dense<0.000000e+00> : vector<1x128xf32>
    %117 = tpu.matmul %116, %22, %cst_51 {dimension_numbers = #tpu.dot_dimension_numbers<[1], [0], [0], [1], [0, 0, 1, 1], [], []>} : vector<1x128xf32>, vector<128x128xf32>, vector<1x128xf32> -> vector<1x128xf32>
    %cst_52 = arith.constant 3.906250e-03 : f32
    %118 = vector.broadcast %cst_52 : f32 to vector<1x128xf32>
    %119 = arith.mulf %117, %118 : vector<1x128xf32>
    %120 = vector.broadcast %119 : vector<1x128xf32> to vector<16x128xf32>
    %121 = arith.subf %114, %120 : vector<16x128xf32>
    %122 = arith.mulf %121, %121 : vector<16x128xf32>
    %cst_53 = arith.constant dense<0.000000e+00> : vector<128xf32>
    %123 = vector.multi_reduction <add>, %122, %cst_53 [0] : vector<16x128xf32> to vector<128xf32>
    %124 = vector.shape_cast %123 : vector<128xf32> to vector<1x128xf32>
    %cst_54 = arith.constant dense<0.000000e+00> : vector<1x128xf32>
    %125 = tpu.matmul %124, %22, %cst_54 {dimension_numbers = #tpu.dot_dimension_numbers<[1], [0], [0], [1], [0, 0, 1, 1], [], []>} : vector<1x128xf32>, vector<128x128xf32>, vector<1x128xf32> -> vector<1x128xf32>
    %cst_55 = arith.constant 3.906250e-03 : f32
    %126 = vector.broadcast %cst_55 : f32 to vector<1x128xf32>
    %127 = arith.mulf %125, %126 : vector<1x128xf32>
    %cst_56 = arith.constant 9.99999974E-6 : f32
    %128 = vector.broadcast %cst_56 : f32 to vector<1x128xf32>
    %129 = arith.addf %127, %128 : vector<1x128xf32>
    %130 = math.rsqrt %129 : vector<1x128xf32>
    %131 = vector.broadcast %130 : vector<1x128xf32> to vector<16x128xf32>
    %132 = arith.mulf %121, %131 : vector<16x128xf32>
    %133 = tpu.concatenate %113, %132 in 0 : vector<16x128xf32>, vector<16x128xf32> -> vector<32x128xf32>
    %134 = arith.mulf %133, %84 : vector<32x128xf32>
    %135 = arith.addf %134, %85 : vector<32x128xf32>
    %136 = arith.negf %135 : vector<32x128xf32>
    %137 = math.exp %136 : vector<32x128xf32>
    %cst_57 = arith.constant 1.000000e+00 : f32
    %138 = vector.broadcast %cst_57 : f32 to vector<32x128xf32>
    %139 = arith.addf %138, %137 : vector<32x128xf32>
    %140 = arith.divf %138, %139 : vector<32x128xf32>
    %141 = arith.mulf %135, %140 : vector<32x128xf32>
    %c0_58 = arith.constant 0 : index
    %c0_59 = arith.constant 0 : index
    %142 = vector.load %arg10[%c0_58, %c0_59] : memref<32x128xf32, #tpu.memory_space<vmem>>, vector<32x128xf32>
    tpu.vector_store %arg10[%c0_58, %c0_59], %141 {strides = array<i32>} : memref<32x128xf32, #tpu.memory_space<vmem>>, vector<32x128xf32>,
    return
  }
}

</mosaic_0001>

<bundles_post_ra>
// kernel: tile.50
= control target key start
LH: loop header
LB: loop body
LE: loop exit
PB: predicated region body
PF: predicated region fallthrough
CT: control target
= control target key end

     0   :  { %s28_s0 = inlined_call_operand.vmem [shape: f32[8], index: 0, kind: input, shape index: {}]   ;;  %s29_s1 = inlined_call_operand.vmem [shape: f32[16,8], index: 1, kind: output, shape index: {}]  }
   0x1   :  { %v4_v0 = vld [vmem:[%s28_s0] ss:$0 sm:$0xff] }
   0x2   :  { %5 = vst [vmem:[%s29_s1] sm:$0xff] %v4_v0  ;;  %8 = vst [vmem:[%s29_s1 + $0x8] sm:$0xff] %v4_v0 }

// kernel: tile.51
= control target key start
LH: loop header
LB: loop body
LE: loop exit
PB: predicated region body
PF: predicated region fallthrough
CT: control target
= control target key end

     0   :  { %s131_s10 = smov 120   ;;  %s132_s11 = smov 104   ;;  %vm3_vm0 = vcmask 64512   ;;  %vm9_vm1 = vcmask 1048512   ;;  %vm15_vm2 = vcmask 982912   ;;  %vm21_vm3 = vcmask 917312   ;;  %s207_s0 = inlined_call_operand.vmem [shape: f32[16,8], index: 0, kind: input, shape index: {}]   ;;  %s208_s1 = inlined_call_operand.vmem [shape: f32[1,128], index: 1, kind: output, shape index: {}]  }
   0x1   :  { %v101_v0 = vld [vmem:[%s207_s0 + $0xf] sm:$0x1]   ;;  %v103_v1 = vld [vmem:[%s207_s0 + $0xd] sm:$0x1]   ;;  %v102_v2 = vld [vmem:[%s207_s0 + $0xe] sm:$0x1]  }
   0x2   :  { %7 = vrot.lane.b32.xlu0 %v101_v0, %s131_s10  ;;  %19 = vrot.lane.b32.xlu1 %v103_v1, %s132_s11  ;;  %v104_v3 = vld [vmem:[%s207_s0 + $0xc] sm:$0x1]   ;;  %s133_s16 = smov 112   ;;  %s134_s17 = smov 96   ;;  %v105_v4 = vld [vmem:[%s207_s0 + $0xb] sm:$0x1]  }
   0x3   :  { %v106_v5 = vld [vmem:[%s207_s0 + $0xa] sm:$0x1]   ;;  %v2_v6 = vld [vmem:[%s207_s0] sm:$0x1]   ;;  %s135_s24 = smov 88   ;;  %s136_s25 = smov 80  }
   0x4   :  { %4 = vst.msk [vmem:[#allocation0] sm:$0x1] %vm3_vm0, %v2_v6   ;;  %v107_v7 = vld [vmem:[%s207_s0 + $0x9] sm:$0x1]   ;;  %v108_v8 = vld [vmem:[%s207_s0 + $0x8] sm:$0x1]  }
   0x5   :  { %s137_s30 = smov 72   ;;  %s138_s2 = smov 64   ;;  %v109_v9 = vld [vmem:[%s207_s0 + $0x7] sm:$0x1]   ;;  %v110_v10 = vld [vmem:[%s207_s0 + $0x6] sm:$0x1]  }
   0x6   :  { %13 = vrot.lane.b32.xlu0 %v102_v2, %s133_s16  ;;  %25 = vrot.lane.b32.xlu1 %v104_v3, %s134_s17  ;;  %s139_s7 = smov 56   ;;  %s140_s8 = smov 48   ;;  %v111_v11 = vld [vmem:[%s207_s0 + $0x5] sm:$0x1]   ;;  %v112_v12 = vld [vmem:[%s207_s0 + $0x4] sm:$0x1]  }
   0x7   :  { %s141_s13 = smov 40   ;;  %s142_s14 = smov 32   ;;  %v113_v13 = vld [vmem:[%s207_s0 + $0x3] sm:$0x1]   ;;  %v114_v14 = vld [vmem:[%s207_s0 + $0x2] sm:$0x1]  }
   0x8   :  { %s143_s19 = smov 24   ;;  %s144_s20 = smov 16   ;;  %v115_v15 = vld [vmem:[%s207_s0 + $0x1] sm:$0x1]   ;;  %vm27_vm4 = vcmask 851712   ;;  %vm33_vm5 = vcmask 786112  }
   0x9   :  { %s145_s0 = smov 8   ;;  %vm39_vm6 = vcmask 720512   ;;  %vm45_vm7 = vcmask 654912   ;;  %vm51_vm8 = vcmask 589312   ;;  %vm57_vm9 = vcmask 523712  }
   0xa   :  { %31 = vrot.lane.b32.xlu0 %v105_v4, %s135_s24  ;;  %37 = vrot.lane.b32.xlu1 %v106_v5, %s136_s25  ;;  %vm63_vm10 = vcmask 458112   ;;  %vm69_vm11 = vcmask 392512   ;;  %vm75_vm12 = vcmask 326912   ;;  %vm81_vm13 = vcmask 261312  }
   0xb   :  { %vm87_vm14 = vcmask 195712   ;;  %vm93_vm15 = vcmask 130112  }
   0xe   :  { %43 = vrot.lane.b32.xlu0 %v107_v7, %s137_s30  ;;  %49 = vrot.lane.b32.xlu1 %v108_v8, %s138_s2 }
  0x12   :  { %55 = vrot.lane.b32.xlu0 %v109_v9, %s139_s7  ;;  %61 = vrot.lane.b32.xlu1 %v110_v10, %s140_s8 }
  0x16   :  { %67 = vrot.lane.b32.xlu0 %v111_v11, %s141_s13  ;;  %73 = vrot.lane.b32.xlu1 %v112_v12, %s142_s14 }
  0x1a   :  { %79 = vrot.lane.b32.xlu0 %v113_v13, %s143_s19  ;;  %85 = vrot.lane.b32.xlu1 %v114_v14, %s144_s20 }
  0x1e   :  { %91 = vrot.lane.b32.xlu0 %v115_v15, %s145_s0 }
  0x74   :  { %v8_v16 = vpop.permute.xlu0 %7   ;;  %v20_v17 = vpop.permute.xlu1 %19  }
  0x75   :  { %10 = vst.msk [vmem:[#allocation0] sm:$0x1] %vm9_vm1, %v8_v16  }
  0x78   :  { %v14_v18 = vpop.permute.xlu0 %13   ;;  %v26_v19 = vpop.permute.xlu1 %25  }
  0x79   :  { %16 = vst.msk [vmem:[#allocation0] sm:$0x1] %vm15_vm2, %v14_v18  }
  0x7a   :  { %22 = vst.msk [vmem:[#allocation0] sm:$0x1] %vm21_vm3, %v20_v17  }
  0x7b   :  { %28 = vst.msk [vmem:[#allocation0] sm:$0x1] %vm27_vm4, %v26_v19  }
  0x7c   :  { %v32_v20 = vpop.permute.xlu0 %31   ;;  %v38_v21 = vpop.permute.xlu1 %37  }
  0x7d   :  { %34 = vst.msk [vmem:[#allocation0] sm:$0x1] %vm33_vm5, %v32_v20  }
  0x7e   :  { %40 = vst.msk [vmem:[#allocation0] sm:$0x1] %vm39_vm6, %v38_v21  }
  0x80   :  { %v44_v22 = vpop.permute.xlu0 %43   ;;  %v50_v23 = vpop.permute.xlu1 %49  }
  0x81   :  { %46 = vst.msk [vmem:[#allocation0] sm:$0x1] %vm45_vm7, %v44_v22  }
  0x82   :  { %52 = vst.msk [vmem:[#allocation0] sm:$0x1] %vm51_vm8, %v50_v23  }
  0x84   :  { %v56_v24 = vpop.permute.xlu0 %55   ;;  %v62_v25 = vpop.permute.xlu1 %61  }
  0x85   :  { %58 = vst.msk [vmem:[#allocation0] sm:$0x1] %vm57_vm9, %v56_v24  }
  0x86   :  { %64 = vst.msk [vmem:[#allocation0] sm:$0x1] %vm63_vm10, %v62_v25  }
  0x88   :  { %v68_v26 = vpop.permute.xlu0 %67   ;;  %v74_v27 = vpop.permute.xlu1 %73  }
  0x89   :  { %70 = vst.msk [vmem:[#allocation0] sm:$0x1] %vm69_vm11, %v68_v26  }
  0x8a   :  { %76 = vst.msk [vmem:[#allocation0] sm:$0x1] %vm75_vm12, %v74_v27  }
  0x8c   :  { %v80_v28 = vpop.permute.xlu0 %79   ;;  %v86_v29 = vpop.permute.xlu1 %85  }
  0x8d   :  { %82 = vst.msk [vmem:[#allocation0] sm:$0x1] %vm81_vm13, %v80_v28  }
  0x8e   :  { %88 = vst.msk [vmem:[#allocation0] sm:$0x1] %vm87_vm14, %v86_v29  }
  0x90   :  { %v92_v30 = vpop.permute.xlu0 %91  }
  0x91   :  { %94 = vst.msk [vmem:[#allocation0] sm:$0x1] %vm93_vm15, %v92_v30  }
  0x98   :  { %v98_v31 = vld [vmem:[#allocation0] sm:$0x1] }
  0x99   :  { %100 = vst [vmem:[%s208_s1] sm:$0x1] %v98_v31 }

// kernel: _lambda_.1
= control target key start
LH: loop header
LB: loop body
LE: loop exit
PB: predicated region body
PF: predicated region fallthrough
CT: control target
= control target key end

     0   :  { %v35_v37 = vlaneseq  ;;  %vm2402_vm6 = vmmov 0   ;;  %s3155_s2 = inlined_call_operand.vmem [shape: f32[384,128], index: 2, kind: input, shape index: {}]   ;;  %s3156_s0 = inlined_call_operand.vmem [shape: f32[32,128], index: 0, kind: input, shape index: {}]   ;;  %s3157_s1 = inlined_call_operand.vmem [shape: f32[128,128], index: 1, kind: input, shape index: {}]   ;;  %s3158_s3 = inlined_call_operand.vmem [shape: f32[1,128], index: 3, kind: input, shape index: {}]   ;;  %s3159_s6 = inlined_call_operand.vmem [shape: f32[384,128], index: 6, kind: input, shape index: {}]   ;;  %s3160_s4 = inlined_call_operand.vmem [shape: f32[32,128], index: 4, kind: input, shape index: {}]   ;;  %s3161_s5 = inlined_call_operand.vmem [shape: f32[32,128], index: 5, kind: input, shape index: {}]   ;;  %s3162_s7 = inlined_call_operand.vmem [shape: f32[1,128], index: 7, kind: input, shape index: {}]   ;;  %s3163_s8 = inlined_call_operand.vmem [shape: f32[32,128], index: 8, kind: input, shape index: {}]   ;;  %s3164_s9 = inlined_call_operand.vmem [shape: f32[32,128], index: 9, kind: input, shape index: {}]   ;;  %s3165_s10 = inlined_call_operand.vmem [shape: f32[32,128], index: 10, kind: output, shape index: {}]  }
   0x1   :  { %v167_v0 = vld [vmem:[%s3155_s2 + $0x80] sm:$0xff]  ;;  %v168_v1 = vld [vmem:[%s3155_s2 + $0x88] sm:$0xff]  ;;  %v169_v5 = vld [vmem:[%s3155_s2 + $0x90] sm:$0xff] }
   0x2   :  { %v151_v2 = vld [vmem:[%s3155_s2] sm:$0xff]  ;;  %v2038_v3 = vpack.c.bf16 %v168_v1, %v167_v0  ;;  %v152_v4 = vld [vmem:[%s3155_s2 + $0x8] sm:$0xff]  ;;  %v170_v6 = vld [vmem:[%s3155_s2 + $0x98] sm:$0xff]  ;;  %v2560_v48 = vshrl.u32 %v35_v37, 7 }
   0x3   :  { %v2040_v7 = vpack.c.bf16 %v152_v4, %v151_v2  ;;  %v2042_v8 = vpack.c.bf16 %v170_v6, %v169_v5  ;;  %v183_v9 = vld [vmem:[%s3155_s2 + $0x100] sm:$0xff]  ;;  %v184_v10 = vld [vmem:[%s3155_s2 + $0x108] sm:$0xff]  ;;  %v153_v11 = vld [vmem:[%s3155_s2 + $0x10] sm:$0xff] }
   0x4   :  { %2039 = vmatprep.subr.bf16.mxu0 %v2038_v3  ;;  %v2070_v12 = vpack.c.bf16 %v184_v10, %v183_v9  ;;  %v154_v13 = vld [vmem:[%s3155_s2 + $0x18] sm:$0xff]  ;;  %v171_v14 = vld [vmem:[%s3155_s2 + $0xa0] sm:$0xff]  ;;  %v172_v15 = vld [vmem:[%s3155_s2 + $0xa8] sm:$0xff]  ;;  %vm142_vm0 = vcmp.lt.s32.totalorder %v2560_v48, 7  ;;  %vm129_vm1 = vcmp.lt.s32.totalorder %v2560_v48, 1 }
   0x5   :  { %2041 = vmatpush3.bf16.msra.mxu0 %v2040_v7  ;;  %v2044_v16 = vpack.c.bf16 %v154_v13, %v153_v11  ;;  %v185_v17 = vld [vmem:[%s3155_s2 + $0x110] sm:$0xff]  ;;  %v186_v18 = vld [vmem:[%s3155_s2 + $0x118] sm:$0xff]  ;;  %v2046_v19 = vpack.c.bf16 %v172_v15, %v171_v14  ;;  %v155_v21 = vld [vmem:[%s3155_s2 + $0x20] sm:$0xff]  ;;  %v37_v14 = vadd.s32 8, %v2560_v48 }
   0x6   :  { %2043 = vmatprep.subr.bf16.mxu0 %v2042_v8  ;;  %2071 = vmatprep.subr.bf16.mxu1 %v2070_v12  ;;  %v2074_v20 = vpack.c.bf16 %v186_v18, %v185_v17  ;;  %v156_v22 = vld [vmem:[%s3155_s2 + $0x28] sm:$0xff]  ;;  %v173_v23 = vld [vmem:[%s3155_s2 + $0xb0] sm:$0xff]  ;;  %v174_v24 = vld [vmem:[%s3155_s2 + $0xb8] sm:$0xff] }
   0x7   :  { %2073 = vmatpush3.bf16.msra.mxu1 %v2070_v12  ;;  %v187_v25 = vld [vmem:[%s3155_s2 + $0x120] sm:$0xff]  ;;  %v188_v26 = vld [vmem:[%s3155_s2 + $0x128] sm:$0xff]  ;;  %v2048_v28 = vpack.c.bf16 %v156_v22, %v155_v21  ;;  %v189_v29 = vld [vmem:[%s3155_s2 + $0x130] sm:$0xff]  ;;  %v2050_v31 = vpack.c.bf16 %v174_v24, %v173_v23  ;;  %v51_v23 = vand.u32 15, %v37_v14 }
   0x8   :  { %2075 = vmatprep.subr.bf16.mxu1 %v2074_v20  ;;  %v2078_v27 = vpack.c.bf16 %v188_v26, %v187_v25  ;;  %v190_v30 = vld [vmem:[%s3155_s2 + $0x138] sm:$0xff]  ;;  %v157_v32 = vld [vmem:[%s3155_s2 + $0x30] sm:$0xff]  ;;  %v175_v34 = vld [vmem:[%s3155_s2 + $0xc0] sm:$0xff]  ;;  %v39_v25 = vadd.s32 24, %v2560_v48  ;;  %v38_v26 = vadd.s32 16, %v2560_v48 }
   0x9   :  { %2045 = vmatpush3.bf16.msra.mxu0 %v2044_v16  ;;  %v158_v33 = vld [vmem:[%s3155_s2 + $0x38] sm:$0xff]  ;;  %v176_v35 = vld [vmem:[%s3155_s2 + $0xc8] sm:$0xff]  ;;  %v2082_v36 = vpack.c.bf16 %v190_v30, %v189_v29  ;;  %v191_v39 = vld [vmem:[%s3155_s2 + $0x140] sm:$0xff]  ;;  %vm2661_vm3 = vcmp.ne.s32.totalorder %v51_v23, 15 }
   0xa   :  { %2047 = vmatprep.subr.bf16.mxu0 %v2046_v19  ;;  %v2052_v38 = vpack.c.bf16 %v158_v33, %v157_v32  ;;  %v192_v40 = vld [vmem:[%s3155_s2 + $0x148] sm:$0xff]  ;;  %v2054_v41 = vpack.c.bf16 %v176_v35, %v175_v34  ;;  %v159_v42 = vld [vmem:[%s3155_s2 + $0x40] sm:$0xff]  ;;  %v177_v44 = vld [vmem:[%s3155_s2 + $0xd0] sm:$0xff]  ;;  %v44_v19 = vand.u32 15, %v2560_v48  ;;  %v2401_v32 = vmov 0.0|0.0  }
   0xb   :  { %2077 = vmatpush3.bf16.msra.mxu1 %v2074_v20  ;;  %v160_v43 = vld [vmem:[%s3155_s2 + $0x48] sm:$0xff]  ;;  %v178_v45 = vld [vmem:[%s3155_s2 + $0xd8] sm:$0xff]  ;;  %v2086_v46 = vpack.c.bf16 %v192_v40, %v191_v39  ;;  %v2558_v47 = vld [vmem:[%s3156_s0] sm:$0xff]  ;;  %v65_v37 = vand.u32 15, %v39_v25  ;;  %v58_v40 = vand.u32 15, %v38_v26 }
   0xc   :  { %2079 = vmatprep.subr.bf16.mxu1 %v2078_v27  ;;  %v2056_v49 = vpack.c.bf16 %v160_v43, %v159_v42  ;;  %v193_v50 = vld [vmem:[%s3155_s2 + $0x150] sm:$0xff]  ;;  %v194_v51 = vld [vmem:[%s3155_s2 + $0x158] sm:$0xff]  ;;  %v138_v52 = vrot.slane %v2558_v47, 1  ;;  %269 = vmatprep.mubr.f32.mxu0 %v2558_v47  ;;  %v2058_v53 = vpack.c.bf16 %v178_v45, %v177_v44  ;;  %v2579_v56 = vld [vmem:[%s3156_s0 + $0x8] sm:$0xff]  ;;  %v125_v18 = vrot.slane %v2558_v47, 7 }
   0xd   :  { %2049 = vmatpush3.bf16.msra.mxu0 %v2048_v28  ;;  %v161_v54 = vld [vmem:[%s3155_s2 + $0x50] sm:$0xff]  ;;  %v162_v55 = vld [vmem:[%s3155_s2 + $0x58] sm:$0xff]  ;;  %v179_v57 = vld [vmem:[%s3155_s2 + $0xe0] sm:$0xff]  ;;  %v139_v59 = vrot.slane %v2579_v56, 1  ;;  %v2090_v60 = vpack.c.bf16 %v194_v51, %v193_v50  ;;  %vm2645_vm2 = vcmp.ne.s32.totalorder %v44_v19, 0  ;;  %v126_v30 = vrot.slane %v2579_v56, 7 }
   0xe   :  { %2051 = vmatprep.subr.bf16.mxu0 %v2050_v31  ;;  %v180_v58 = vld [vmem:[%s3155_s2 + $0xe8] sm:$0xff]  ;;  %v2060_v61 = vpack.c.bf16 %v162_v55, %v161_v54  ;;  %v195_v62 = vld [vmem:[%s3155_s2 + $0x160] sm:$0xff]  ;;  %v181_v4 = vld [vmem:[%s3155_s2 + $0xf0] sm:$0xff]  ;;  %vm2681_vm4 = vcmp.ne.s32.totalorder %v65_v37, 15  ;;  %vm2691_vm5 = vcmp.ne.s32.totalorder %v58_v40, 0 }
   0xf   :  { %2081 = vmatpush3.bf16.msra.mxu1 %v2078_v27  ;;  %v196_v63 = vld [vmem:[%s3155_s2 + $0x168] sm:$0xff]  ;;  %v145_v0 = vsel %vm142_vm0, %v138_v52, %v139_v59  ;;  %v2062_v1 = vpack.c.bf16 %v180_v58, %v179_v57  ;;  %v163_v2 = vld [vmem:[%s3155_s2 + $0x60] sm:$0xff]  ;;  %v182_v5 = vld [vmem:[%s3155_s2 + $0xf8] sm:$0xff]  ;;  %v132_v39 = vsel %vm129_vm1, %v125_v18, %v126_v30 }
  0x10   :  { %2083 = vmatprep.subr.bf16.mxu1 %v2082_v36  ;;  %v164_v3 = vld [vmem:[%s3155_s2 + $0x68] sm:$0xff]  ;;  %1714 = vmatprep.mubr.f32.mxu1 %v145_v0  ;;  %v2094_v6 = vpack.c.bf16 %v196_v63, %v195_v62  ;;  %v197_v8 = vld [vmem:[%s3155_s2 + $0x170] sm:$0xff]  ;;  %v198_v9 = vld [vmem:[%s3155_s2 + $0x178] sm:$0xff]  ;;  %v2066_v10 = vpack.c.bf16 %v182_v5, %v181_v4 }
  0x11   :  { %2053 = vmatpush3.bf16.msra.mxu0 %v2052_v38  ;;  %v2064_v7 = vpack.c.bf16 %v164_v3, %v163_v2  ;;  %v165_v11 = vld [vmem:[%s3155_s2 + $0x70] sm:$0xff]  ;;  %v166_v12 = vld [vmem:[%s3155_s2 + $0x78] sm:$0xff]  ;;  %v2098_v16 = vpack.c.bf16 %v198_v9, %v197_v8  ;;  %v96_v21 = vld [vmem:[%s3157_s1] sm:$0xff]  ;;  %v2403_v3 = vmov 0.0  }
  0x12   :  { %2055 = vmatprep.subr.bf16.mxu0 %v2054_v41  ;;  %v2626_v13 = vld [vmem:[%s3156_s0 + $0x18] sm:$0xff]  ;;  %v114_v15 = vld [vmem:[%s3156_s0 + $0x10] sm:$0xff]  ;;  %v2068_v17 = vpack.c.bf16 %v166_v12, %v165_v11  ;;  %v97_v22 = vld [vmem:[%s3157_s1 + $0x8] sm:$0xff] }
  0x13   :  { %2085 = vmatpush3.bf16.msra.mxu1 %v2082_v36  ;;  %v128_v20 = vrot.slane %v2626_v13, 7  ;;  %v140_v24 = vrot.slane %v114_v15, 1  ;;  %v141_v27 = vrot.slane %v2626_v13, 1  ;;  %v2652_v31 = vpack.c.bf16 %v97_v22, %v96_v21  ;;  %v98_v33 = vld [vmem:[%s3157_s1 + $0x10] sm:$0xff]  ;;  %v99_v34 = vld [vmem:[%s3157_s1 + $0x18] sm:$0xff]  ;;  %v101_v50 = vld [vmem:[%s3157_s1 + $0x28] sm:$0xff] }
  0x14   :  { %2087 = vmatprep.subr.bf16.mxu1 %v2086_v46  ;;  %v127_v41 = vrot.slane %v114_v15, 7  ;;  %v2676_v42 = vpack.c.bf16 %v99_v34, %v98_v33  ;;  %v104_v55 = vld [vmem:[%s3157_s1 + $0x40] sm:$0xff]  ;;  %v106_v58 = vld [vmem:[%s3157_s1 + $0x50] sm:$0xff]  ;;  %v109_v62 = vld [vmem:[%s3157_s1 + $0x68] sm:$0xff] }
  0x15   :  { %2057 = vmatpush3.bf16.msra.mxu0 %v2056_v49  ;;  %v133_v29 = vsel %vm129_vm1, %v128_v20, %v125_v18  ;;  %v144_v36 = vsel %vm142_vm0, %v139_v59, %v140_v24  ;;  %v143_v38 = vsel %vm142_vm0, %v140_v24, %v141_v27  ;;  %v146_v44 = vsel %vm142_vm0, %v141_v27, %v138_v52  ;;  %v100_v49 = vld [vmem:[%s3157_s1 + $0x20] sm:$0xff]  ;;  %v102_v52 = vld [vmem:[%s3157_s1 + $0x30] sm:$0xff]  ;;  %v107_v59 = vld [vmem:[%s3157_s1 + $0x58] sm:$0xff] }
  0x16   :  { %2059 = vmatprep.subr.bf16.mxu0 %v2058_v53  ;;  %v130_v47 = vsel %vm129_vm1, %v127_v41, %v128_v20  ;;  %v2714_v51 = vpack.c.bf16 %v101_v50, %v100_v49  ;;  %v103_v53 = vld [vmem:[%s3157_s1 + $0x38] sm:$0xff]  ;;  %v110_v0 = vld [vmem:[%s3157_s1 + $0x70] sm:$0xff] }
  0x17   :  { %2089 = vmatpush3.bf16.msra.mxu1 %v2086_v46  ;;  %v131_v46 = vsel %vm129_vm1, %v126_v30, %v127_v41  ;;  %v2726_v54 = vpack.c.bf16 %v103_v53, %v102_v52  ;;  %v2805_v52 = vsub.s32 0, %v2560_v48 }
  0x18   :  { %2091 = vmatprep.subr.bf16.mxu1 %v2090_v60 }
  0x19   :  { %2061 = vmatpush3.bf16.msra.mxu0 %v2060_v61  ;;  %v108_v61 = vld [vmem:[%s3157_s1 + $0x60] sm:$0xff] }
  0x1a   :  { %2063 = vmatprep.subr.bf16.mxu0 %v2062_v1  ;;  %v2762_v63 = vpack.c.bf16 %v109_v62, %v108_v61  ;;  %v111_v1 = vld [vmem:[%s3157_s1 + $0x78] sm:$0xff] }
  0x1b   :  { %2093 = vmatpush3.bf16.msra.mxu1 %v2090_v60  ;;  %v2750_v60 = vpack.c.bf16 %v107_v59, %v106_v58  ;;  %v2774_v2 = vpack.c.bf16 %v111_v1, %v110_v0 }
  0x1c   :  { %2095 = vmatprep.subr.bf16.mxu1 %v2094_v6 }
  0x1d   :  { %2065 = vmatpush3.bf16.msra.mxu0 %v2064_v7 }
  0x1e   :  { %2067 = vmatprep.subr.bf16.mxu0 %v2066_v10 }
  0x1f   :  { %2097 = vmatpush3.bf16.msra.mxu1 %v2094_v6  ;;  %v1400_v6 = vld [vmem:[%s3158_s3] ss:$0 sm:$0xff] }
  0x20   :  { %2099 = vmatprep.subr.bf16.mxu1 %v2098_v16 }
  0x21   :  { %2069 = vmatpush3.bf16.msra.mxu0 %v2068_v17 }
  0x22   :  { %2102 = vmatprep.subr.bf16.mxu0 %v2401_v32 }
  0x23   :  { %2101 = vmatpush3.bf16.msra.mxu1 %v2098_v16 }
  0x24   :  { %1401 = vmatmul.mubr.msk.f32.vlgmr.msra.gmra.mrb[0].mxu0 %vm2645_vm2, %v133_v29  ;;  %2126 = vmatprep.subr.bf16.mxu1 %v2401_v32 }
  0x25   :  { %274 = vmatprep.mubr.f32.mxu0 %v2579_v56  ;;  %2104 = vmatpush3.bf16.msra.mxu0 %v2652_v31  ;;  %v105_v56 = vld [vmem:[%s3157_s1 + $0x48] sm:$0xff] }
  0x26   :  { %1715 = vmatmul.mubr.msk.f32.vlgmr.msra.gmra.mrb[0].mxu1 %vm2661_vm3, %v144_v36  ;;  %2105 = vmatprep.subr.bf16.mxu0 %v2401_v32  ;;  %v2738_v57 = vpack.c.bf16 %v105_v56, %v104_v55 }
  0x27   :  { %1717 = vmatprep.mubr.f32.mxu1 %v143_v38  ;;  %2128 = vmatpush3.bf16.msra.mxu1 %v2652_v31 }
  0x28   :  { %275 = vmatmul.mubr.f32.gmra.mrb[2].mxu0 %v132_v39  ;;  %2129 = vmatprep.subr.bf16.mxu1 %v2401_v32 }
  0x29   :  { %279 = vmatprep.mubr.f32.mxu0 %v114_v15  ;;  %2107 = vmatpush3.bf16.msra.mxu0 %v2676_v42 }
  0x2a   :  { %1718 = vmatmul.mubr.msk.f32.gmra.mrb[2].mxu1 %vm2681_vm4, %v146_v44  ;;  %2108 = vmatprep.subr.bf16.mxu0 %v2401_v32 }
  0x2b   :  { %2131 = vmatpush3.bf16.msra.mxu1 %v2676_v42  ;;  %1787 = vmatprep.mubr.msk.f32.mxu1 %vm2402_vm6, %v2403_v3 }
  0x2c   :  { %1402 = vmatmul.mubr.msk.f32.gmra.mrb[4].mxu0 %vm2691_vm5, %v131_v46  ;;  %2132 = vmatprep.subr.bf16.mxu1 %v2401_v32 }
  0x2d   :  { %284 = vmatprep.mubr.f32.mxu0 %v2626_v13  ;;  %2110 = vmatpush3.bf16.msra.mxu0 %v2714_v51 }
  0x2e   :  { %2111 = vmatprep.subr.bf16.mxu0 %v2401_v32 }
  0x2f   :  { %2134 = vmatpush3.bf16.msra.mxu1 %v2714_v51 }
  0x30   :  { %285 = vmatmul.mubr.f32.gmra.mrb[6].mxu0 %v130_v47  ;;  %2135 = vmatprep.subr.bf16.mxu1 %v2401_v32 }
  0x31   :  { %2113 = vmatpush3.bf16.msra.mxu0 %v2726_v54  ;;  %1752 = vmatprep.mubr.msk.f32.mxu0 %vm2402_vm6, %v2403_v3 }
  0x32   :  { %2114 = vmatprep.subr.bf16.mxu0 %v2401_v32 }
  0x33   :  { %2137 = vmatpush3.bf16.msra.mxu1 %v2726_v54 }
  0x34   :  { %2138 = vmatprep.subr.bf16.mxu1 %v2401_v32 }
  0x35   :  { %2116 = vmatpush3.bf16.msra.mxu0 %v2738_v57 }
  0x36   :  { %2117 = vmatprep.subr.bf16.mxu0 %v2401_v32 }
  0x37   :  { %2140 = vmatpush3.bf16.msra.mxu1 %v2738_v57 }
  0x38   :  { %2141 = vmatprep.subr.bf16.mxu1 %v2401_v32 }
  0x39   :  { %2119 = vmatpush3.bf16.msra.mxu0 %v2750_v60 }
  0x3a   :  { %2120 = vmatprep.subr.bf16.mxu0 %v2401_v32 }
  0x3b   :  { %2143 = vmatpush3.bf16.msra.mxu1 %v2750_v60 }
  0x3c   :  { %2144 = vmatprep.subr.bf16.mxu1 %v2401_v32 }
  0x3d   :  { %2122 = vmatpush3.bf16.msra.mxu0 %v2762_v63 }
  0x3e   :  { %2123 = vmatprep.subr.bf16.mxu0 %v2401_v32 }
  0x3f   :  { %2146 = vmatpush3.bf16.msra.mxu1 %v2762_v63 }
  0x40   :  { %2147 = vmatprep.subr.bf16.mxu1 %v2401_v32 }
  0x41   :  { %2125 = vmatpush3.bf16.msra.mxu0 %v2774_v2 }
  0x42   :  { %2150 = vmatprep.subr.bf16.mxu0 %v2401_v32 }
  0x43   :  { %2149 = vmatpush3.bf16.msra.mxu1 %v2774_v2 }
  0x44   :  { %2174 = vmatprep.subr.bf16.mxu1 %v2401_v32 }
  0xf7   :  { %v1450_v4 = vpop.f32.mrb[0].mxu0 }
  0xf8   :  { %v1451_v5 = vpop.f32.mrb[1].mxu0 }
  0xf9   :  { %v1452_v7 = vadd.f32 %v1451_v5, %v1450_v4  ;;  %v1716_v8 = vpop.f32.mrb[0].mxu1 }
  0xfa   :  { %v356_v9 = vpop.f32.mrb[1].mxu1 }
  0xfb   :  { %v1453_v10 = vpop.f32.mrb[2].mxu0  ;;  %v272_v11 = vadd.f32 %v1452_v7, %v1400_v6 }
  0xfc   :  { %v1454_v12 = vpop.f32.mrb[3].mxu0 }
  0xfd   :  { %v1455_v13 = vadd.f32 %v1454_v12, %v1453_v10  ;;  %v357_v14 = vadd.f32 %v356_v9, %v272_v11  ;;  %v1719_v15 = vpop.f32.mrb[2].mxu1 }
  0xfe   :  { %v366_v16 = vpop.f32.mrb[3].mxu1 }
  0xff   :  { %v277_v17 = vadd.f32 %v1455_v13, %v1400_v6  ;;  %v1456_v18 = vpop.f32.mrb[4].mxu0 }
 0x100   :  { %v1457_v19 = vpop.f32.mrb[5].mxu0 }
 0x101   :  { %v362_v20 = vadd.f32 %v1716_v8, %v277_v17  ;;  %v1458_v21 = vadd.f32 %v1457_v19, %v1456_v18 }
 0x103   :  { %v375_v22 = vadd.f32 %v362_v20, %v357_v14  ;;  %v1459_v23 = vpop.f32.mrb[6].mxu0  ;;  %v282_v24 = vadd.f32 %v1458_v21, %v1400_v6 }
 0x104   :  { %v1460_v25 = vpop.f32.mrb[7].mxu0 }
 0x105   :  { %v376_v26 = vrot.slane %v375_v22, 4  ;;  %v1461_v27 = vadd.f32 %v1460_v25, %v1459_v23  ;;  %v367_v29 = vadd.f32 %v366_v16, %v282_v24  ;;  %v804_v25 = vld [vmem:[%s3159_s6 + $0x80] sm:$0xff] }
 0x107   :  { %v377_v30 = vadd.f32 %v376_v26, %v375_v22  ;;  %v287_v33 = vadd.f32 %v1461_v27, %v1400_v6  ;;  %v805_v26 = vld [vmem:[%s3159_s6 + $0x88] sm:$0xff]  ;;  %v820_v27 = vld [vmem:[%s3159_s6 + $0x100] sm:$0xff] }
 0x109   :  { %v378_v34 = vrot.slane %v377_v30, 2  ;;  %v372_v36 = vadd.f32 %v1719_v15, %v287_v33  ;;  %v788_v33 = vld [vmem:[%s3159_s6] sm:$0xff] }
 0x10b   :  { %v379_v37 = vadd.f32 %v378_v34, %v377_v30  ;;  %v547_v40 = vadd.f32 %v372_v36, %v367_v29  ;;  %v821_v30 = vld [vmem:[%s3159_s6 + $0x108] sm:$0xff] }
 0x10c   :  { %v789_v34 = vld [vmem:[%s3159_s6 + $0x8] sm:$0xff] }
 0x10d   :  { %v380_v38 = vrot.slane %v379_v37, 1  ;;  %v548_v41 = vrot.slane %v547_v40, 4 }
 0x10f   :  { %v381_v39 = vadd.f32 %v380_v38, %v379_v37  ;;  %v549_v44 = vadd.f32 %v548_v41, %v547_v40  ;;  %v2200_v37 = vpack.c.bf16 %v789_v34, %v788_v33  ;;  %v806_v38 = vld [vmem:[%s3159_s6 + $0x90] sm:$0xff]  ;;  %v831_v33 = vld [vmem:[%s3159_s6 + $0x158] sm:$0xff] }
 0x110   :  { %v822_v40 = vld [vmem:[%s3159_s6 + $0x110] sm:$0xff] }
 0x111   :  { %1753 = vmatmul.mubr.f32.vlgmr.msra.gmra.mrb[8].mxu0 %v381_v39  ;;  %v550_v46 = vrot.slane %v549_v44, 2  ;;  %v807_v39 = vld [vmem:[%s3159_s6 + $0x98] sm:$0xff]  ;;  %v798_v34 = vld [vmem:[%s3159_s6 + $0x50] sm:$0xff] }
 0x112   :  { %2152 = vmatpush3.bf16.msra.mxu0 %v2652_v31  ;;  %1822 = vmatprep.mubr.msk.f32.mxu0 %vm2402_vm6, %v2403_v3  ;;  %v2202_v41 = vpack.c.bf16 %v807_v39, %v806_v38  ;;  %v816_v39 = vld [vmem:[%s3159_s6 + $0xe0] sm:$0xff] }
 0x113   :  { %2153 = vmatprep.subr.bf16.mxu0 %v2401_v32  ;;  %v551_v47 = vadd.f32 %v550_v46, %v549_v44  ;;  %v823_v44 = vld [vmem:[%s3159_s6 + $0x118] sm:$0xff]  ;;  %v790_v46 = vld [vmem:[%s3159_s6 + $0x10] sm:$0xff] }
 0x115   :  { %v552_v49 = vrot.slane %v551_v47, 1 }
 0x116   :  { %2155 = vmatpush3.bf16.msra.mxu0 %v2676_v42 }
 0x117   :  { %2156 = vmatprep.subr.bf16.mxu0 %v2401_v32  ;;  %v553_v50 = vadd.f32 %v552_v49, %v551_v47  ;;  %v791_v47 = vld [vmem:[%s3159_s6 + $0x18] sm:$0xff]  ;;  %v2234_v49 = vpack.c.bf16 %v823_v44, %v822_v40  ;;  %v817_v40 = vld [vmem:[%s3159_s6 + $0xe8] sm:$0xff] }
 0x118   :  { %v2222_v44 = vpack.c.bf16 %v817_v40, %v816_v39  ;;  %v119_v40 = vld [vmem:[%s3160_s4 + $0x10] sm:$0xff] }
 0x11a   :  { %2158 = vmatpush3.bf16.msra.mxu0 %v2714_v51 }
 0x11b   :  { %2159 = vmatprep.subr.bf16.mxu0 %v2401_v32 }
 0x11e   :  { %2161 = vmatpush3.bf16.msra.mxu0 %v2726_v54 }
 0x11f   :  { %2162 = vmatprep.subr.bf16.mxu0 %v2401_v32 }
 0x122   :  { %2164 = vmatpush3.bf16.msra.mxu0 %v2738_v57 }
 0x123   :  { %2165 = vmatprep.subr.bf16.mxu0 %v2401_v32 }
 0x126   :  { %2167 = vmatpush3.bf16.msra.mxu0 %v2750_v60 }
 0x127   :  { %2168 = vmatprep.subr.bf16.mxu0 %v2401_v32 }
 0x12a   :  { %2170 = vmatpush3.bf16.msra.mxu0 %v2762_v63 }
 0x12b   :  { %2171 = vmatprep.subr.bf16.mxu0 %v2401_v32 }
 0x12e   :  { %2173 = vmatpush3.bf16.msra.mxu0 %v2774_v2 }
 0x131   :  { %1823 = vmatmul.mubr.f32.vlgmr.msra.gmra.mrb[10].mxu0 %v553_v50  ;;  %v2204_v50 = vpack.c.bf16 %v791_v47, %v790_v46  ;;  %v833_v46 = vld [vmem:[%s3159_s6 + $0x168] sm:$0xff]  ;;  %v800_v47 = vld [vmem:[%s3159_s6 + $0x60] sm:$0xff] }
 0x1e4   :  { %v448_v53 = vpop.f32.mrb[8].mxu0 }
 0x1e5   :  { %v452_v55 = vmul.f32 0.00390625, %v448_v53  ;;  %v1754_v56 = vpop.f32.mrb[9].mxu0  ;;  %v808_v53 = vld [vmem:[%s3159_s6 + $0xa0] sm:$0xff] }
 0x1e6   :  { %v824_v56 = vld [vmem:[%s3159_s6 + $0x120] sm:$0xff] }
 0x1e7   :  { %v456_v58 = vrot.slane %v452_v55, %v2805_v52  ;;  %v809_v55 = vld [vmem:[%s3159_s6 + $0xa8] sm:$0xff] }
 0x1e9   :  { %v2808_v59 = vsub.f32 %v357_v14, %v456_v58  ;;  %v2810_v61 = vsub.f32 %v362_v20, %v456_v58  ;;  %v2206_v58 = vpack.c.bf16 %v809_v55, %v808_v53  ;;  %v818_v53 = vld [vmem:[%s3159_s6 + $0xf0] sm:$0xff]  ;;  %v819_v55 = vld [vmem:[%s3159_s6 + $0xf8] sm:$0xff] }
 0x1eb   :  { %v459_v62 = vmul.f32 %v2808_v59, %v2808_v59  ;;  %v460_v0 = vmul.f32 %v2810_v61, %v2810_v61 }
 0x1ed   :  { %v461_v1 = vadd.f32 %v460_v0, %v459_v62  ;;  %v825_v62 = vld [vmem:[%s3159_s6 + $0x128] sm:$0xff]  ;;  %v792_v0 = vld [vmem:[%s3159_s6 + $0x20] sm:$0xff] }
 0x1ef   :  { %v462_v4 = vrot.slane %v461_v1, 4 }
 0x1f1   :  { %v463_v5 = vadd.f32 %v462_v4, %v461_v1  ;;  %v793_v1 = vld [vmem:[%s3159_s6 + $0x28] sm:$0xff]  ;;  %v2238_v4 = vpack.c.bf16 %v825_v62, %v824_v56  ;;  %v834_v56 = vld [vmem:[%s3159_s6 + $0x170] sm:$0xff]  ;;  %v835_v62 = vld [vmem:[%s3159_s6 + $0x178] sm:$0xff] }
 0x1f3   :  { %v464_v6 = vrot.slane %v463_v5, 2 }
 0x1f5   :  { %v465_v7 = vadd.f32 %v464_v6, %v463_v5  ;;  %v2208_v5 = vpack.c.bf16 %v793_v1, %v792_v0  ;;  %v810_v6 = vld [vmem:[%s3159_s6 + $0xb0] sm:$0xff]  ;;  %v2226_v0 = vpack.c.bf16 %v819_v55, %v818_v53  ;;  %v124_v53 = vld [vmem:[%s3161_s5 + $0x18] sm:$0xff] }
 0x1f6   :  { %v802_v1 = vld [vmem:[%s3159_s6 + $0x70] sm:$0xff] }
 0x1f7   :  { %v466_v8 = vrot.slane %v465_v7, 1 }
 0x1f9   :  { %v467_v9 = vadd.f32 %v466_v8, %v465_v7  ;;  %v811_v7 = vld [vmem:[%s3159_s6 + $0xb8] sm:$0xff]  ;;  %v826_v8 = vld [vmem:[%s3159_s6 + $0x130] sm:$0xff] }
 0x1fb   :  { %1788 = vmatmul.mubr.f32.vlgmr.msra.gmra.mrb[4].mxu1 %v467_v9  ;;  %v2210_v9 = vpack.c.bf16 %v811_v7, %v810_v6 }
 0x1fc   :  { %2176 = vmatpush3.bf16.msra.mxu1 %v2652_v31  ;;  %1857 = vmatprep.mubr.msk.f32.mxu1 %vm2402_vm6, %v2403_v3 }
 0x1fd   :  { %2177 = vmatprep.subr.bf16.mxu1 %v2401_v32 }
 0x200   :  { %2179 = vmatpush3.bf16.msra.mxu1 %v2676_v42 }
 0x201   :  { %2180 = vmatprep.subr.bf16.mxu1 %v2401_v32 }
 0x204   :  { %v620_v10 = vpop.f32.mrb[10].mxu0  ;;  %2182 = vmatpush3.bf16.msra.mxu1 %v2714_v51 }
 0x205   :  { %v624_v11 = vmul.f32 0.00390625, %v620_v10  ;;  %v1824_v12 = vpop.f32.mrb[11].mxu0  ;;  %2183 = vmatprep.subr.bf16.mxu1 %v2401_v32  ;;  %v827_v10 = vld [vmem:[%s3159_s6 + $0x138] sm:$0xff] }
 0x206   :  { %v795_v12 = vld [vmem:[%s3159_s6 + $0x38] sm:$0xff] }
 0x207   :  { %v628_v13 = vrot.slane %v624_v11, %v2805_v52  ;;  %v794_v11 = vld [vmem:[%s3159_s6 + $0x30] sm:$0xff] }
 0x208   :  { %2185 = vmatpush3.bf16.msra.mxu1 %v2726_v54 }
 0x209   :  { %v2826_v14 = vsub.f32 %v367_v29, %v628_v13  ;;  %v2828_v15 = vsub.f32 %v372_v36, %v628_v13  ;;  %2186 = vmatprep.subr.bf16.mxu1 %v2401_v32  ;;  %v2198_v29 = vpack.c.bf16 %v805_v26, %v804_v25  ;;  %v2230_v36 = vpack.c.bf16 %v821_v30, %v820_v27  ;;  %v814_v26 = vld [vmem:[%s3159_s6 + $0xd0] sm:$0xff]  ;;  %v815_v27 = vld [vmem:[%s3159_s6 + $0xd8] sm:$0xff] }
 0x20a   :  { %v2242_v13 = vpack.c.bf16 %v827_v10, %v826_v8  ;;  %v2218_v30 = vpack.c.bf16 %v815_v27, %v814_v26 }
 0x20b   :  { %v631_v16 = vmul.f32 %v2826_v14, %v2826_v14  ;;  %v632_v17 = vmul.f32 %v2828_v15, %v2828_v15  ;;  %2199 = vmatprep.subr.bf16.mxu0 %v2198_v29  ;;  %v830_v29 = vld [vmem:[%s3159_s6 + $0x150] sm:$0xff] }
 0x20c   :  { %2188 = vmatpush3.bf16.msra.mxu1 %v2738_v57  ;;  %2201 = vmatpush3.bf16.msra.mxu0 %v2200_v37  ;;  %v2250_v37 = vpack.c.bf16 %v831_v33, %v830_v29 }
 0x20d   :  { %v633_v18 = vadd.f32 %v632_v17, %v631_v16  ;;  %2189 = vmatprep.subr.bf16.mxu1 %v2401_v32  ;;  %2203 = vmatprep.subr.bf16.mxu0 %v2202_v41  ;;  %v2212_v16 = vpack.c.bf16 %v795_v12, %v794_v11  ;;  %v812_v17 = vld [vmem:[%s3159_s6 + $0xc0] sm:$0xff] }
 0x20e   :  { %v832_v41 = vld [vmem:[%s3159_s6 + $0x160] sm:$0xff] }
 0x20f   :  { %v634_v19 = vrot.slane %v633_v18, 4 }
 0x210   :  { %2191 = vmatpush3.bf16.msra.mxu1 %v2750_v60  ;;  %2205 = vmatpush3.bf16.msra.mxu0 %v2204_v50  ;;  %v2254_v50 = vpack.c.bf16 %v833_v46, %v832_v41  ;;  %v120_v41 = vld [vmem:[%s3160_s4 + $0x18] sm:$0xff] }
 0x211   :  { %v635_v20 = vadd.f32 %v634_v19, %v633_v18  ;;  %2192 = vmatprep.subr.bf16.mxu1 %v2401_v32  ;;  %2207 = vmatprep.subr.bf16.mxu0 %v2206_v58  ;;  %v813_v18 = vld [vmem:[%s3159_s6 + $0xc8] sm:$0xff]  ;;  %v828_v19 = vld [vmem:[%s3159_s6 + $0x140] sm:$0xff] }
 0x213   :  { %v636_v21 = vrot.slane %v635_v20, 2 }
 0x214   :  { %2194 = vmatpush3.bf16.msra.mxu1 %v2762_v63  ;;  %2209 = vmatpush3.bf16.msra.mxu0 %v2208_v5  ;;  %v2258_v5 = vpack.c.bf16 %v835_v62, %v834_v56 }
 0x215   :  { %2195 = vmatprep.subr.bf16.mxu1 %v2401_v32  ;;  %v637_v22 = vadd.f32 %v636_v21, %v635_v20  ;;  %2211 = vmatprep.subr.bf16.mxu0 %v2210_v9  ;;  %v2214_v20 = vpack.c.bf16 %v813_v18, %v812_v17  ;;  %v829_v21 = vld [vmem:[%s3159_s6 + $0x148] sm:$0xff] }
 0x217   :  { %v638_v23 = vrot.slane %v637_v22, 1 }
 0x218   :  { %2197 = vmatpush3.bf16.msra.mxu1 %v2774_v2  ;;  %2213 = vmatpush3.bf16.msra.mxu0 %v2212_v16  ;;  %v118_v16 = vld [vmem:[%s3160_s4 + $0x8] sm:$0xff] }
 0x219   :  { %v639_v24 = vadd.f32 %v638_v23, %v637_v22  ;;  %2231 = vmatprep.subr.bf16.mxu1 %v2230_v36  ;;  %v796_v22 = vld [vmem:[%s3159_s6 + $0x40] sm:$0xff]  ;;  %v797_v23 = vld [vmem:[%s3159_s6 + $0x48] sm:$0xff]  ;;  %2215 = vmatprep.subr.bf16.mxu0 %v2214_v20 }
 0x21a   :  { %v2216_v25 = vpack.c.bf16 %v797_v23, %v796_v22  ;;  %v122_v20 = vld [vmem:[%s3161_s5 + $0x8] sm:$0xff] }
 0x21b   :  { %1858 = vmatmul.mubr.f32.vlgmr.msra.gmra.mrb[6].mxu1 %v639_v24  ;;  %v2246_v24 = vpack.c.bf16 %v829_v21, %v828_v19  ;;  %v121_v19 = vld [vmem:[%s3161_s5] sm:$0xff] }
 0x21c   :  { %2233 = vmatpush3.bf16.msra.mxu1 %v2230_v36  ;;  %2217 = vmatpush3.bf16.msra.mxu0 %v2216_v25  ;;  %v799_v36 = vld [vmem:[%s3159_s6 + $0x58] sm:$0xff] }
 0x21d   :  { %2235 = vmatprep.subr.bf16.mxu1 %v2234_v49  ;;  %v2220_v38 = vpack.c.bf16 %v799_v36, %v798_v34  ;;  %2219 = vmatprep.subr.bf16.mxu0 %v2218_v30 }
 0x220   :  { %2237 = vmatpush3.bf16.msra.mxu1 %v2234_v49  ;;  %v801_v49 = vld [vmem:[%s3159_s6 + $0x68] sm:$0xff]  ;;  %2221 = vmatpush3.bf16.msra.mxu0 %v2220_v38 }
 0x221   :  { %2239 = vmatprep.subr.bf16.mxu1 %v2238_v4  ;;  %v2224_v58 = vpack.c.bf16 %v801_v49, %v800_v47  ;;  %2223 = vmatprep.subr.bf16.mxu0 %v2222_v44 }
 0x224   :  { %2241 = vmatpush3.bf16.msra.mxu1 %v2238_v4  ;;  %v803_v4 = vld [vmem:[%s3159_s6 + $0x78] sm:$0xff]  ;;  %2225 = vmatpush3.bf16.msra.mxu0 %v2224_v58 }
 0x225   :  { %2243 = vmatprep.subr.bf16.mxu1 %v2242_v13  ;;  %v2228_v6 = vpack.c.bf16 %v803_v4, %v802_v1  ;;  %2227 = vmatprep.subr.bf16.mxu0 %v2226_v0 }
 0x228   :  { %2245 = vmatpush3.bf16.msra.mxu1 %v2242_v13  ;;  %2229 = vmatpush3.bf16.msra.mxu0 %v2228_v6  ;;  %v117_v13 = vld [vmem:[%s3160_s4] sm:$0xff] }
 0x229   :  { %2247 = vmatprep.subr.bf16.mxu1 %v2246_v24  ;;  %2262 = vmatprep.subr.bf16.mxu0 %v2401_v32 }
 0x22c   :  { %2249 = vmatpush3.bf16.msra.mxu1 %v2246_v24 }
 0x22d   :  { %2251 = vmatprep.subr.bf16.mxu1 %v2250_v37 }
 0x230   :  { %2253 = vmatpush3.bf16.msra.mxu1 %v2250_v37 }
 0x231   :  { %2255 = vmatprep.subr.bf16.mxu1 %v2254_v50 }
 0x234   :  { %2257 = vmatpush3.bf16.msra.mxu1 %v2254_v50  ;;  %v123_v50 = vld [vmem:[%s3161_s5 + $0x10] sm:$0xff] }
 0x235   :  { %2259 = vmatprep.subr.bf16.mxu1 %v2258_v5 }
 0x238   :  { %2261 = vmatpush3.bf16.msra.mxu1 %v2258_v5 }
 0x239   :  { %2286 = vmatprep.subr.bf16.mxu1 %v2401_v32 }
 0x2ce   :  { %v534_v7 = vpop.f32.mrb[4].mxu1 }
 0x2cf   :  { %v538_v8 = vmul.f32 0.00390625, %v534_v7  ;;  %v1789_v9 = vpop.f32.mrb[5].mxu1 }
 0x2d1   :  { %v539_v10 = vadd.f32 1e-05, %v538_v8 }
 0x2d3   :  { %2361 = vrsqrt.f32 %v539_v10 }
 0x2dd   :  { %v2362_v11 = vpop.eup %2361 }
 0x2de   :  { %v544_v12 = vrot.slane %v2362_v11, %v2805_v52 }
 0x2e0   :  { %v545_v17 = vmul.f32 %v544_v12, %v2808_v59  ;;  %v546_v18 = vmul.f32 %v544_v12, %v2810_v61 }
 0x2e2   :  { %v719_v21 = vmul.f32 %v545_v17, %v117_v13  ;;  %v720_v22 = vmul.f32 %v546_v18, %v118_v16 }
 0x2e4   :  { %v723_v23 = vadd.f32 %v719_v21, %v121_v19  ;;  %v724_v24 = vadd.f32 %v720_v22, %v122_v20 }
 0x2e6   :  { %v1405_v25 = vmul.f32 -1.442695, %v723_v23  ;;  %v1406_v26 = vmul.f32 -1.442695, %v724_v24 }
 0x2e8   :  { %2363 = vpow2.f32 %v1405_v25 }
 0x2e9   :  { %2365 = vpow2.f32 %v1406_v26 }
 0x2ee   :  { %v706_v27 = vpop.f32.mrb[6].mxu1 }
 0x2ef   :  { %v710_v59 = vmul.f32 0.00390625, %v706_v27  ;;  %v1859_v29 = vpop.f32.mrb[7].mxu1 }
 0x2f1   :  { %v711_v61 = vadd.f32 1e-05, %v710_v59  ;;  %v1409_v59 = vld [vmem:[%s3162_s7] ss:$0 sm:$0xff] }
 0x2f2   :  { %v2364_v30 = vpop.eup %2363 }
 0x2f3   :  { %v2366_v33 = vpop.eup %2365  ;;  %2367 = vrsqrt.f32 %v711_v61  ;;  %v739_v34 = vadd.f32 1.0, %v2364_v30 }
 0x2f4   :  { %v740_v36 = vadd.f32 1.0, %v2366_v33 }
 0x2f5   :  { %2369 = vrcp.f32 %v739_v34 }
 0x2f6   :  { %2371 = vrcp.f32 %v740_v36 }
 0x2fd   :  { %v2368_v37 = vpop.eup %2367 }
 0x2fe   :  { %v716_v38 = vrot.slane %v2368_v37, %v2805_v52 }
 0x2ff   :  { %v2370_v39 = vpop.eup %2369 }
 0x300   :  { %v2372_v44 = vpop.eup %2371  ;;  %v717_v46 = vmul.f32 %v716_v38, %v2826_v14  ;;  %v718_v47 = vmul.f32 %v716_v38, %v2828_v15  ;;  %v751_v49 = vmul.f32 %v2370_v39, %v723_v23 }
 0x301   :  { %v752_v55 = vmul.f32 %v2372_v44, %v724_v24 }
 0x302   :  { %v721_v56 = vmul.f32 %v717_v46, %v119_v40  ;;  %v722_v58 = vmul.f32 %v718_v47, %v120_v41  ;;  %906 = vmatprep.mubr.f32.mxu0 %v751_v49  ;;  %v776_v62 = vrot.slane %v751_v49, 1  ;;  %v764_v19 = vrot.slane %v751_v49, 7 }
 0x303   :  { %v777_v0 = vrot.slane %v752_v55, 1  ;;  %v765_v17 = vrot.slane %v752_v55, 7 }
 0x304   :  { %v725_v1 = vadd.f32 %v721_v56, %v123_v50  ;;  %v726_v4 = vadd.f32 %v722_v58, %v124_v53 }
 0x305   :  { %v782_v14 = vsel %vm142_vm0, %v776_v62, %v777_v0  ;;  %v770_v35 = vsel %vm129_vm1, %v764_v19, %v765_v17 }
 0x306   :  { %v1407_v15 = vmul.f32 -1.442695, %v725_v1  ;;  %v1408_v5 = vmul.f32 -1.442695, %v726_v4  ;;  %1892 = vmatprep.mubr.f32.mxu1 %v782_v14 }
 0x308   :  { %2373 = vpow2.f32 %v1407_v15 }
 0x309   :  { %2375 = vpow2.f32 %v1408_v5 }
 0x312   :  { %v2374_v6 = vpop.eup %2373 }
 0x313   :  { %v2376_v7 = vpop.eup %2375  ;;  %v741_v8 = vadd.f32 1.0, %v2374_v6 }
 0x314   :  { %v742_v9 = vadd.f32 1.0, %v2376_v7 }
 0x315   :  { %2377 = vrcp.f32 %v741_v8 }
 0x316   :  { %2379 = vrcp.f32 %v742_v9 }
 0x31f   :  { %v2378_v10 = vpop.eup %2377 }
 0x320   :  { %v2380_v11 = vpop.eup %2379  ;;  %v753_v12 = vmul.f32 %v2378_v10, %v725_v1 }
 0x321   :  { %v754_v13 = vmul.f32 %v2380_v11, %v726_v4 }
 0x322   :  { %v778_v16 = vrot.slane %v753_v12, 1  ;;  %v766_v18 = vrot.slane %v753_v12, 7 }
 0x323   :  { %v767_v20 = vrot.slane %v754_v13, 7  ;;  %v779_v21 = vrot.slane %v754_v13, 1 }
 0x324   :  { %v781_v22 = vsel %vm142_vm0, %v777_v0, %v778_v16  ;;  %v769_v23 = vsel %vm129_vm1, %v765_v17, %v766_v18 }
 0x325   :  { %v771_v24 = vsel %vm129_vm1, %v767_v20, %v764_v19  ;;  %1893 = vmatmul.mubr.msk.f32.vlgmr.msra.gmra.mrb[8].mxu1 %vm2661_vm3, %v781_v22  ;;  %v780_v25 = vsel %vm142_vm0, %v778_v16, %v779_v21  ;;  %v783_v26 = vsel %vm142_vm0, %v779_v21, %v776_v62  ;;  %v768_v28 = vsel %vm129_vm1, %v766_v18, %v767_v20 }
 0x326   :  { %1410 = vmatmul.mubr.msk.f32.vlgmr.msra.gmra.mrb[12].mxu0 %vm2645_vm2, %v771_v24  ;;  %1895 = vmatprep.mubr.f32.mxu1 %v780_v25 }
 0x327   :  { %911 = vmatprep.mubr.f32.mxu0 %v752_v55  ;;  %2264 = vmatpush3.bf16.msra.mxu0 %v2652_v31 }
 0x328   :  { %2265 = vmatprep.subr.bf16.mxu0 %v2401_v32  ;;  %2288 = vmatpush3.bf16.msra.mxu1 %v2652_v31 }
 0x329   :  { %1896 = vmatmul.mubr.msk.f32.gmra.mrb[10].mxu1 %vm2681_vm4, %v783_v26  ;;  %2289 = vmatprep.subr.bf16.mxu1 %v2401_v32 }
 0x32a   :  { %912 = vmatmul.mubr.f32.gmra.mrb[14].mxu0 %v770_v35  ;;  %1965 = vmatprep.mubr.msk.f32.mxu1 %vm2402_vm6, %v2403_v3 }
 0x32b   :  { %916 = vmatprep.mubr.f32.mxu0 %v753_v12  ;;  %2267 = vmatpush3.bf16.msra.mxu0 %v2676_v42 }
 0x32c   :  { %2268 = vmatprep.subr.bf16.mxu0 %v2401_v32  ;;  %2291 = vmatpush3.bf16.msra.mxu1 %v2676_v42 }
 0x32d   :  { %2292 = vmatprep.subr.bf16.mxu1 %v2401_v32 }
 0x32e   :  { %1411 = vmatmul.mubr.msk.f32.gmra.mrb[16].mxu0 %vm2691_vm5, %v769_v23 }
 0x32f   :  { %921 = vmatprep.mubr.f32.mxu0 %v754_v13  ;;  %2270 = vmatpush3.bf16.msra.mxu0 %v2714_v51 }
 0x330   :  { %2271 = vmatprep.subr.bf16.mxu0 %v2401_v32  ;;  %2294 = vmatpush3.bf16.msra.mxu1 %v2714_v51 }
 0x331   :  { %2295 = vmatprep.subr.bf16.mxu1 %v2401_v32 }
 0x332   :  { %922 = vmatmul.mubr.f32.gmra.mrb[18].mxu0 %v768_v28 }
 0x333   :  { %2273 = vmatpush3.bf16.msra.mxu0 %v2726_v54  ;;  %1930 = vmatprep.mubr.msk.f32.mxu0 %vm2402_vm6, %v2403_v3 }
 0x334   :  { %2274 = vmatprep.subr.bf16.mxu0 %v2401_v32  ;;  %2297 = vmatpush3.bf16.msra.mxu1 %v2726_v54 }
 0x335   :  { %2298 = vmatprep.subr.bf16.mxu1 %v2401_v32 }
 0x337   :  { %2276 = vmatpush3.bf16.msra.mxu0 %v2738_v57 }
 0x338   :  { %2277 = vmatprep.subr.bf16.mxu0 %v2401_v32  ;;  %2300 = vmatpush3.bf16.msra.mxu1 %v2738_v57 }
 0x339   :  { %2301 = vmatprep.subr.bf16.mxu1 %v2401_v32 }
 0x33b   :  { %2279 = vmatpush3.bf16.msra.mxu0 %v2750_v60 }
 0x33c   :  { %2280 = vmatprep.subr.bf16.mxu0 %v2401_v32  ;;  %2303 = vmatpush3.bf16.msra.mxu1 %v2750_v60 }
 0x33d   :  { %2304 = vmatprep.subr.bf16.mxu1 %v2401_v32 }
 0x33f   :  { %2282 = vmatpush3.bf16.msra.mxu0 %v2762_v63 }
 0x340   :  { %2283 = vmatprep.subr.bf16.mxu0 %v2401_v32  ;;  %2306 = vmatpush3.bf16.msra.mxu1 %v2762_v63 }
 0x341   :  { %2307 = vmatprep.subr.bf16.mxu1 %v2401_v32 }
 0x343   :  { %2285 = vmatpush3.bf16.msra.mxu0 %v2774_v2 }
 0x344   :  { %2310 = vmatprep.subr.bf16.mxu0 %v2401_v32  ;;  %2309 = vmatpush3.bf16.msra.mxu1 %v2774_v2 }
 0x345   :  { %2334 = vmatprep.subr.bf16.mxu1 %v2401_v32 }
 0x3f8   :  { %v1894_v48 = vpop.f32.mrb[8].mxu1 }
 0x3f9   :  { %v1582_v43 = vpop.f32.mrb[12].mxu0  ;;  %v993_v45 = vpop.f32.mrb[9].mxu1 }
 0x3fa   :  { %v1583_v27 = vpop.f32.mrb[13].mxu0 }
 0x3fb   :  { %v1584_v29 = vadd.f32 %v1583_v27, %v1582_v43 }
 0x3fc   :  { %v1897_v61 = vpop.f32.mrb[10].mxu1 }
 0x3fd   :  { %v909_v30 = vadd.f32 %v1584_v29, %v1409_v59  ;;  %v1585_v33 = vpop.f32.mrb[14].mxu0  ;;  %v1003_v34 = vpop.f32.mrb[11].mxu1 }
 0x3fe   :  { %v1586_v36 = vpop.f32.mrb[15].mxu0 }
 0x3ff   :  { %v994_v37 = vadd.f32 %v993_v45, %v909_v30  ;;  %v1587_v38 = vadd.f32 %v1586_v36, %v1585_v33 }
 0x401   :  { %v914_v39 = vadd.f32 %v1587_v38, %v1409_v59  ;;  %v1588_v40 = vpop.f32.mrb[16].mxu0 }
 0x402   :  { %v1589_v41 = vpop.f32.mrb[17].mxu0 }
 0x403   :  { %v999_v44 = vadd.f32 %v1894_v48, %v914_v39  ;;  %v1590_v46 = vadd.f32 %v1589_v41, %v1588_v40 }
 0x405   :  { %v1012_v47 = vadd.f32 %v999_v44, %v994_v37  ;;  %v919_v49 = vadd.f32 %v1590_v46, %v1409_v59  ;;  %v1591_v50 = vpop.f32.mrb[18].mxu0  ;;  %v761_v46 = vld [vmem:[%s3164_s9 + $0x8] sm:$0xff] }
 0x406   :  { %v1592_v53 = vpop.f32.mrb[19].mxu0 }
 0x407   :  { %v1013_v55 = vrot.slane %v1012_v47, 4  ;;  %v1004_v56 = vadd.f32 %v1003_v34, %v919_v49  ;;  %v1593_v58 = vadd.f32 %v1592_v53, %v1591_v50 }
 0x409   :  { %v1014_v62 = vadd.f32 %v1013_v55, %v1012_v47  ;;  %v924_v0 = vadd.f32 %v1593_v58, %v1409_v59 }
 0x40b   :  { %v1015_v1 = vrot.slane %v1014_v62, 2  ;;  %v1009_v4 = vadd.f32 %v1897_v61, %v924_v0 }
 0x40d   :  { %v1016_v14 = vadd.f32 %v1015_v1, %v1014_v62  ;;  %v1184_v6 = vadd.f32 %v1009_v4, %v1004_v56 }
 0x40f   :  { %v1017_v15 = vrot.slane %v1016_v14, 1  ;;  %v1185_v7 = vrot.slane %v1184_v6, 4 }
 0x411   :  { %v1018_v5 = vadd.f32 %v1017_v15, %v1016_v14  ;;  %v1186_v8 = vadd.f32 %v1185_v7, %v1184_v6 }
 0x413   :  { %1931 = vmatmul.mubr.f32.vlgmr.msra.gmra.mrb[20].mxu0 %v1018_v5  ;;  %v1187_v9 = vrot.slane %v1186_v8, 2 }
 0x414   :  { %2312 = vmatpush3.bf16.msra.mxu0 %v2652_v31  ;;  %2000 = vmatprep.mubr.msk.f32.mxu0 %vm2402_vm6, %v2403_v3 }
 0x415   :  { %2313 = vmatprep.subr.bf16.mxu0 %v2401_v32  ;;  %v1188_v10 = vadd.f32 %v1187_v9, %v1186_v8  ;;  %v758_v9 = vld [vmem:[%s3163_s8 + $0x10] sm:$0xff] }
 0x417   :  { %v1189_v11 = vrot.slane %v1188_v10, 1 }
 0x418   :  { %2315 = vmatpush3.bf16.msra.mxu0 %v2676_v42 }
 0x419   :  { %2316 = vmatprep.subr.bf16.mxu0 %v2401_v32  ;;  %v1190_v12 = vadd.f32 %v1189_v11, %v1188_v10  ;;  %v759_v10 = vld [vmem:[%s3163_s8 + $0x18] sm:$0xff] }
 0x41c   :  { %2318 = vmatpush3.bf16.msra.mxu0 %v2714_v51 }
 0x41d   :  { %2319 = vmatprep.subr.bf16.mxu0 %v2401_v32 }
 0x420   :  { %2321 = vmatpush3.bf16.msra.mxu0 %v2726_v54 }
 0x421   :  { %2322 = vmatprep.subr.bf16.mxu0 %v2401_v32 }
 0x424   :  { %2324 = vmatpush3.bf16.msra.mxu0 %v2738_v57 }
 0x425   :  { %2325 = vmatprep.subr.bf16.mxu0 %v2401_v32 }
 0x428   :  { %2327 = vmatpush3.bf16.msra.mxu0 %v2750_v60 }
 0x429   :  { %2328 = vmatprep.subr.bf16.mxu0 %v2401_v32 }
 0x42c   :  { %2330 = vmatpush3.bf16.msra.mxu0 %v2762_v63 }
 0x42d   :  { %2331 = vmatprep.subr.bf16.mxu0 %v2401_v32 }
 0x430   :  { %2333 = vmatpush3.bf16.msra.mxu0 %v2774_v2 }
 0x433   :  { %2001 = vmatmul.mubr.f32.vlgmr.msra.gmra.mrb[22].mxu0 %v1190_v12 }
 0x4e6   :  { %v1085_v13 = vpop.f32.mrb[20].mxu0 }
 0x4e7   :  { %v1089_v16 = vmul.f32 0.00390625, %v1085_v13  ;;  %v1932_v17 = vpop.f32.mrb[21].mxu0 }
 0x4e9   :  { %v1093_v18 = vrot.slane %v1089_v16, %v2805_v52 }
 0x4eb   :  { %v1094_v19 = vsub.f32 %v994_v37, %v1093_v18  ;;  %v1095_v20 = vsub.f32 %v999_v44, %v1093_v18  ;;  %v760_v44 = vld [vmem:[%s3164_s9] sm:$0xff]  ;;  %v762_v18 = vld [vmem:[%s3164_s9 + $0x10] sm:$0xff] }
 0x4ed   :  { %v1096_v21 = vmul.f32 %v1094_v19, %v1094_v19  ;;  %v1097_v22 = vmul.f32 %v1095_v20, %v1095_v20 }
 0x4ef   :  { %v1098_v23 = vadd.f32 %v1097_v22, %v1096_v21 }
 0x4f1   :  { %v1099_v24 = vrot.slane %v1098_v23, 4 }
 0x4f3   :  { %v1100_v25 = vadd.f32 %v1099_v24, %v1098_v23 }
 0x4f5   :  { %v1101_v26 = vrot.slane %v1100_v25, 2 }
 0x4f7   :  { %v1102_v35 = vadd.f32 %v1101_v26, %v1100_v25 }
 0x4f9   :  { %v1103_v28 = vrot.slane %v1102_v35, 1 }
 0x4fb   :  { %v1104_v48 = vadd.f32 %v1103_v28, %v1102_v35 }
 0x4fd   :  { %1966 = vmatmul.mubr.f32.vlgmr.msra.gmra.mrb[12].mxu1 %v1104_v48 }
 0x4fe   :  { %2336 = vmatpush3.bf16.msra.mxu1 %v2652_v31  ;;  %2035 = vmatprep.mubr.msk.f32.mxu1 %vm2402_vm6, %v2403_v3 }
 0x4ff   :  { %2337 = vmatprep.subr.bf16.mxu1 %v2401_v32 }
 0x502   :  { %2339 = vmatpush3.bf16.msra.mxu1 %v2676_v42 }
 0x503   :  { %2340 = vmatprep.subr.bf16.mxu1 %v2401_v32 }
 0x506   :  { %v1257_v43 = vpop.f32.mrb[22].mxu0  ;;  %2342 = vmatpush3.bf16.msra.mxu1 %v2714_v51 }
 0x507   :  { %v1261_v45 = vmul.f32 0.00390625, %v1257_v43  ;;  %v2002_v27 = vpop.f32.mrb[23].mxu0  ;;  %2343 = vmatprep.subr.bf16.mxu1 %v2401_v32 }
 0x509   :  { %v1265_v59 = vrot.slane %v1261_v45, %v2805_v52 }
 0x50a   :  { %2345 = vmatpush3.bf16.msra.mxu1 %v2726_v54 }
 0x50b   :  { %v1266_v31 = vsub.f32 %v1004_v56, %v1265_v59  ;;  %v1267_v29 = vsub.f32 %v1009_v4, %v1265_v59  ;;  %2346 = vmatprep.subr.bf16.mxu1 %v2401_v32 }
 0x50d   :  { %v1268_v3 = vmul.f32 %v1266_v31, %v1266_v31  ;;  %v1269_v61 = vmul.f32 %v1267_v29, %v1267_v29 }
 0x50e   :  { %2348 = vmatpush3.bf16.msra.mxu1 %v2738_v57 }
 0x50f   :  { %v1270_v42 = vadd.f32 %v1269_v61, %v1268_v3  ;;  %2349 = vmatprep.subr.bf16.mxu1 %v2401_v32 }
 0x511   :  { %v1271_v51 = vrot.slane %v1270_v42, 4 }
 0x512   :  { %2351 = vmatpush3.bf16.msra.mxu1 %v2750_v60 }
 0x513   :  { %v1272_v30 = vadd.f32 %v1271_v51, %v1270_v42  ;;  %2352 = vmatprep.subr.bf16.mxu1 %v2401_v32 }
 0x515   :  { %v1273_v33 = vrot.slane %v1272_v30, 2 }
 0x516   :  { %2354 = vmatpush3.bf16.msra.mxu1 %v2762_v63  ;;  %v756_v63 = vld [vmem:[%s3163_s8] sm:$0xff] }
 0x517   :  { %2355 = vmatprep.subr.bf16.mxu1 %v2401_v32  ;;  %v1274_v54 = vadd.f32 %v1273_v33, %v1272_v30  ;;  %v757_v32 = vld [vmem:[%s3163_s8 + $0x8] sm:$0xff] }
 0x519   :  { %v1275_v34 = vrot.slane %v1274_v54, 1 }
 0x51a   :  { %2357 = vmatpush3.bf16.msra.mxu1 %v2774_v2 }
 0x51b   :  { %v1276_v36 = vadd.f32 %v1275_v34, %v1274_v54 }
 0x51d   :  { %2036 = vmatmul.mubr.f32.vlgmr.msra.gmra.mrb[14].mxu1 %v1276_v36 }
 0x5d0   :  { %v1171_v57 = vpop.f32.mrb[12].mxu1 }
 0x5d1   :  { %v1175_v37 = vmul.f32 0.00390625, %v1171_v57  ;;  %v1967_v38 = vpop.f32.mrb[13].mxu1 }
 0x5d3   :  { %v1176_v39 = vadd.f32 1e-05, %v1175_v37 }
 0x5d5   :  { %2381 = vrsqrt.f32 %v1176_v39 }
 0x5df   :  { %v2382_v60 = vpop.eup %2381 }
 0x5e0   :  { %v1181_v40 = vrot.slane %v2382_v60, %v2805_v52 }
 0x5e2   :  { %v1182_v41 = vmul.f32 %v1181_v40, %v1094_v19  ;;  %v1183_v2 = vmul.f32 %v1181_v40, %v1095_v20 }
 0x5e4   :  { %v1356_v47 = vmul.f32 %v1182_v41, %v756_v63  ;;  %v1357_v49 = vmul.f32 %v1183_v2, %v757_v32 }
 0x5e6   :  { %v1360_v50 = vadd.f32 %v1356_v47, %v760_v44  ;;  %v1361_v53 = vadd.f32 %v1357_v49, %v761_v46 }
 0x5e8   :  { %v1414_v55 = vmul.f32 -1.442695, %v1360_v50  ;;  %v1415_v56 = vmul.f32 -1.442695, %v1361_v53 }
 0x5ea   :  { %2383 = vpow2.f32 %v1414_v55 }
 0x5eb   :  { %2385 = vpow2.f32 %v1415_v56 }
 0x5f0   :  { %v1343_v58 = vpop.f32.mrb[14].mxu1 }
 0x5f1   :  { %v1347_v62 = vmul.f32 0.00390625, %v1343_v58  ;;  %v2037_v0 = vpop.f32.mrb[15].mxu1 }
 0x5f3   :  { %v1348_v1 = vadd.f32 1e-05, %v1347_v62 }
 0x5f4   :  { %v2384_v4 = vpop.eup %2383 }
 0x5f5   :  { %v2386_v14 = vpop.eup %2385  ;;  %v1376_v15 = vadd.f32 1.0, %v2384_v4  ;;  %2387 = vrsqrt.f32 %v1348_v1 }
 0x5f6   :  { %v1377_v5 = vadd.f32 1.0, %v2386_v14 }
 0x5f7   :  { %2389 = vrcp.f32 %v1376_v15 }
 0x5f8   :  { %2391 = vrcp.f32 %v1377_v5 }
 0x5ff   :  { %v2388_v6 = vpop.eup %2387 }
 0x600   :  { %v1353_v7 = vrot.slane %v2388_v6, %v2805_v52  ;;  %v763_v52 = vld [vmem:[%s3164_s9 + $0x18] sm:$0xff] }
 0x601   :  { %v2390_v8 = vpop.eup %2389 }
 0x602   :  { %v2392_v11 = vpop.eup %2391  ;;  %v1388_v12 = vmul.f32 %v2390_v8, %v1360_v50  ;;  %v1354_v13 = vmul.f32 %v1353_v7, %v1266_v31  ;;  %v1355_v16 = vmul.f32 %v1353_v7, %v1267_v29 }
 0x603   :  { %v1389_v17 = vmul.f32 %v2392_v11, %v1361_v53 }
 0x604   :  { %1392 = vst [vmem:[%s3165_s10] sm:$0xff] %v1388_v12  ;;  %v1358_v19 = vmul.f32 %v1354_v13, %v758_v9  ;;  %v1359_v20 = vmul.f32 %v1355_v16, %v759_v10 }
 0x605   :  { %1393 = vst [vmem:[%s3165_s10 + $0x8] sm:$0xff] %v1389_v17 }
 0x606   :  { %v1362_v21 = vadd.f32 %v1358_v19, %v762_v18  ;;  %v1363_v22 = vadd.f32 %v1359_v20, %v763_v52 }
 0x608   :  { %v1416_v23 = vmul.f32 -1.442695, %v1362_v21  ;;  %v1417_v24 = vmul.f32 -1.442695, %v1363_v22 }
 0x60a   :  { %2393 = vpow2.f32 %v1416_v23 }
 0x60b   :  { %2395 = vpow2.f32 %v1417_v24 }
 0x614   :  { %v2394_v25 = vpop.eup %2393 }
 0x615   :  { %v2396_v26 = vpop.eup %2395  ;;  %v1378_v35 = vadd.f32 1.0, %v2394_v25 }
 0x616   :  { %v1379_v28 = vadd.f32 1.0, %v2396_v26 }
 0x617   :  { %2397 = vrcp.f32 %v1378_v35 }
 0x618   :  { %2399 = vrcp.f32 %v1379_v28 }
 0x621   :  { %v2398_v48 = vpop.eup %2397 }
 0x622   :  { %v2400_v43 = vpop.eup %2399  ;;  %v1390_v45 = vmul.f32 %v2398_v48, %v1362_v21 }
 0x623   :  { %v1391_v27 = vmul.f32 %v2400_v43, %v1363_v22 }
 0x624   :  { %1394 = vst [vmem:[%s3165_s10 + $0x10] sm:$0xff] %v1390_v45 }
 0x625   :  { %1395 = vst [vmem:[%s3165_s10 + $0x18] sm:$0xff] %v1391_v27 }

</bundles_post_ra>
